<compile_context>
chip_gen: v5e
topology: v5e:2x2
jax: 0.10.0
libtpu: 0.0.40
codegen_flags: <defaults>
</compile_context>

<pallas_src>
import jax
import jax.numpy as jnp
from jax import lax
from jax.experimental import pallas as pl
from jax.experimental.pallas import tpu as pltpu

EPS = 1e-5
LANE = 128
SUBLANE = 8
OUT_PAD = 128   # pad the 3-class output to a full 128-lane register


def _round_up(x, m):
    return (x + m - 1) // m * m


def cnn_kernel(x_ref, a_ref, ab_ref, b_ref, bb_ref, c_ref, cb_ref,
               d_ref, db_ref, o_ref):
    # conv1 + BN1 + ReLU  (one MXU matmul, batch in the M dimension)
    h1 = jnp.dot(x_ref[...], a_ref[...], preferred_element_type=jnp.float32)
    h1 = jnp.maximum(h1 + ab_ref[...], 0.0)                 # (Bp, F1p)
    # conv2 + BN2 + ReLU; columns already in PyTorch flatten order (C2-major)
    h2 = jnp.dot(h1, b_ref[...], preferred_element_type=jnp.float32)
    h2 = jnp.maximum(h2 + bb_ref[...], 0.0)                 # (Bp, F2p)
    # fc1 + ReLU
    f1 = jnp.dot(h2, c_ref[...], preferred_element_type=jnp.float32)
    f1 = jnp.maximum(f1 + cb_ref[...], 0.0)                 # (Bp, Hp)
    # fc2 -> single full-width, lane-dense store
    o_ref[...] = jnp.dot(f1, d_ref[...],
                         preferred_element_type=jnp.float32) + db_ref[...]


def cnn_forward(x, params):
    (W1, bc1, g1, be1, m1, v1,
     W2, bc2, g2, be2, m2, v2,
     Wf1, bf1, Wf2, bf2) = params
    B, Cin, L = x.shape
    assert Cin == 1                         # module default input_channels=1
    C1, _, K1 = W1.shape
    C2, _, K2 = W2.shape
    S1, S2 = 4, 2
    L1 = (L - K1) // S1 + 1
    L2 = (L1 - K2) // S2 + 1
    H = Wf1.shape[0]
    OUT = Wf2.shape[0]
    F1 = L1 * C1
    F2 = C2 * L2
    assert Wf1.shape[1] == F2

    # hardware-aligned padded sizes (exact: zero padding on contraction dims)
    Bp = _round_up(B, SUBLANE)
    Lp = _round_up(L, LANE)
    F1p = _round_up(F1, LANE)
    F2p = _round_up(F2, LANE)
    Hp = _round_up(H, LANE)

    # ---- glue: fold eval-mode BatchNorm into conv weights / biases ----
    s1 = g1 / jnp.sqrt(v1 + EPS)
    W1f = W1[:, 0, :] * s1[:, None]                 # (C1, K1)
    b1f = (bc1 - m1) * s1 + be1                     # (C1,)
    s2 = g2 / jnp.sqrt(v2 + EPS)
    W2f = W2 * s2[:, None, None]                    # (C2, C1, K2)
    b2f = (bc2 - m2) * s2 + be2                     # (C2,)

    # ---- glue: each strided conv as one dense (Toeplitz-like) matrix so the
    # whole network becomes 4 matmuls.  Depends only on weights (would be
    # precomputed / cached in a real deployment).
    p_idx = jnp.arange(L1)
    rows1 = S1 * p_idx[:, None] + jnp.arange(K1)[None, :]          # (L1, K1)
    A3 = jnp.zeros((L, L1, C1), jnp.float32)
    A3 = A3.at[rows1, p_idx[:, None], :].set(
        jnp.broadcast_to(W1f.T[None, :, :], (L1, K1, C1)))
    A = A3.reshape(L, F1)                            # columns: p*C1 + c1
    a_bias = jnp.tile(b1f, L1)[None, :]              # (1, F1)

    l_idx = jnp.arange(L2)
    rows2 = S2 * l_idx[:, None] + jnp.arange(K2)[None, :]          # (L2, K2)
    B4 = jnp.zeros((L1, C1, C2, L2), jnp.float32)
    vals2 = jnp.transpose(W2f, (2, 1, 0))            # (K2, C1, C2)
    B4 = B4.at[rows2, :, :, l_idx[:, None]].set(
        jnp.broadcast_to(vals2[None, :, :, :], (L2, K2, C1, C2)))
    Bm = B4.reshape(F1, F2)                # rows: p*C1+c1, cols: c2*L2 + l
    b_bias = jnp.repeat(b2f, L2)[None, :]            # (1, F2)

    # fc weights: Bm's columns already follow PyTorch's x.view(B, -1) order
    # (channel-major), so fc1 needs no permutation.
    Cw = Wf1.T                                       # (F2, H)
    c_bias = bf1[None, :]                            # (1, H)

    # ---- zero-pad everything to (8, 128)-aligned tiles (exact) ----
    x2 = x[:, 0, :]                                  # (B, L)
    x_p = jnp.zeros((Bp, Lp), jnp.float32).at[:B, :L].set(x2)
    A_p = jnp.zeros((Lp, F1p), jnp.float32).at[:L, :F1].set(A)
    ab_p = jnp.zeros((1, F1p), jnp.float32).at[:, :F1].set(a_bias)
    B_p = jnp.zeros((F1p, F2p), jnp.float32).at[:F1, :F2].set(Bm)
    bb_p = jnp.zeros((1, F2p), jnp.float32).at[:, :F2].set(b_bias)
    C_p = jnp.zeros((F2p, Hp), jnp.float32).at[:F2, :H].set(Cw)
    cb_p = jnp.zeros((1, Hp), jnp.float32).at[:, :H].set(c_bias)
    D_p = jnp.zeros((Hp, OUT_PAD), jnp.float32).at[:H, :OUT].set(Wf2.T)
    db_p = jnp.zeros((1, OUT_PAD), jnp.float32).at[0, :OUT].set(bf2)

    flops = 2 * Bp * (Lp * F1p + F1p * F2p + F2p * Hp + Hp * OUT_PAD)
    bytes_accessed = 4 * (Bp * Lp + Lp * F1p + F1p + F1p * F2p + F2p
                          + F2p * Hp + Hp + Hp * OUT_PAD + OUT_PAD
                          + Bp * OUT_PAD)

    vm = pl.BlockSpec(memory_space=pltpu.MemorySpace.VMEM)
    out = pl.pallas_call(
        cnn_kernel,
        out_shape=jax.ShapeDtypeStruct((Bp, OUT_PAD), jnp.float32),
        in_specs=[vm] * 9,
        out_specs=vm,
        cost_estimate=pl.CostEstimate(flops=flops, transcendentals=0,
                                      bytes_accessed=bytes_accessed),
        # No grid: footprint < 3 MiB, grid steps would only add ~0.35 us/step
        # overhead on v5e/v6e.  On v7x with a large batch, add grid=(2,) over
        # batch halves with dimension_semantics=("parallel",) to use both TCs.
    )(x_p, A_p, ab_p, B_p, bb_p, C_p, cb_p, D_p, db_p)
    return out[:B, :OUT]


def torch_reference(x, params):
    """Pure-JAX replica of the PyTorch eval-mode forward (for validation)."""
    (W1, bc1, g1, be1, m1, v1,
     W2, bc2, g2, be2, m2, v2,
     Wf1, bf1, Wf2, bf2) = params

    def bn(y, g, be, m, v):
        return (y - m[None, :, None]) / jnp.sqrt(v[None, :, None] + EPS) \
               * g[None, :, None] + be[None, :, None]

    y = lax.conv_general_dilated(x, W1, (4,), 'VALID',
                                 dimension_numbers=('NCH', 'OIH', 'NCH'))
    y = jnp.maximum(bn(y + bc1[None, :, None], g1, be1, m1, v1), 0.0)
    y = lax.conv_general_dilated(y, W2, (2,), 'VALID',
                                 dimension_numbers=('NCH', 'OIH', 'NCH'))
    y = jnp.maximum(bn(y + bc2[None, :, None], g2, be2, m2, v2), 0.0)
    y = y.reshape(y.shape[0], -1)                    # flatten over (C, L)
    y = jnp.maximum(y @ Wf1.T + bf1, 0.0)
    return y @ Wf2.T + bf2


if __name__ == "__main__":
    key = jax.random.PRNGKey(0)
    keys = jax.random.split(key, 20)

    # small shapes consistent with the module: embed_dim=32, input length 80
    # (conv1: L1=17, conv2: L2=8 -> flatten_size = 8*(embed_dim*2) = 512)
    B, L = 2, 80
    embed_dim = 32
    C1, C2, K1, K2, H, OUT = embed_dim, 2 * embed_dim, 16, 3, 256, 3
    F = 8 * C2

    W1  = 0.1 * jax.random.normal(keys[0], (C1, 1, K1), jnp.float32)
    bc1 = 0.1 * jax.random.normal(keys[1], (C1,), jnp.float32)
    g1  = jax.random.uniform(keys[2], (C1,), jnp.float32, 0.5, 1.5)
    be1 = 0.1 * jax.random.normal(keys[3], (C1,), jnp.float32)
    m1  = 0.1 * jax.random.normal(keys[4], (C1,), jnp.float32)
    v1  = jax.random.uniform(keys[5], (C1,), jnp.float32, 0.5, 1.5)

    W2  = 0.1 * jax.random.normal(keys[6], (C2, C1, K2), jnp.float32)
    bc2 = 0.1 * jax.random.normal(keys[7], (C2,), jnp.float32)
    g2  = jax.random.uniform(keys[8], (C2,), jnp.float32, 0.5, 1.5)
    be2 = 0.1 * jax.random.normal(keys[9], (C2,), jnp.float32)
    m2  = 0.1 * jax.random.normal(keys[10], (C2,), jnp.float32)
    v2  = jax.random.uniform(keys[11], (C2,), jnp.float32, 0.5, 1.5)

    Wf1 = 0.05 * jax.random.normal(keys[12], (H, F), jnp.float32)
    bf1 = 0.05 * jax.random.normal(keys[13], (H,), jnp.float32)
    Wf2 = 0.05 * jax.random.normal(keys[14], (OUT, H), jnp.float32)
    bf2 = 0.05 * jax.random.normal(keys[15], (OUT,), jnp.float32)

    params = (W1, bc1, g1, be1, m1, v1,
              W2, bc2, g2, be2, m2, v2,
              Wf1, bf1, Wf2, bf2)

    x = jax.random.normal(keys[16], (B, 1, L), jnp.float32)

    fwd = jax.jit(cnn_forward)
    out = jax.block_until_ready(fwd(x, params))
    ref = torch_reference(x, params)
    assert out.shape == (B, OUT)
    assert jnp.allclose(out, ref, rtol=1e-4, atol=1e-4), (out, ref)
    print("KERNEL_OK")
</pallas_src>

<mosaic_0001>
module attributes {stable_mosaic.version = 11 : i64} {
  func.func @cnn_kernel(%arg0: memref<8x128xf32, #tpu.memory_space<vmem>>, %arg1: memref<128x640xf32, #tpu.memory_space<vmem>>, %arg2: memref<1x640xf32, #tpu.memory_space<vmem>>, %arg3: memref<640x512xf32, #tpu.memory_space<vmem>>, %arg4: memref<1x512xf32, #tpu.memory_space<vmem>>, %arg5: memref<512x256xf32, #tpu.memory_space<vmem>>, %arg6: memref<1x256xf32, #tpu.memory_space<vmem>>, %arg7: memref<256x128xf32, #tpu.memory_space<vmem>>, %arg8: memref<1x128xf32, #tpu.memory_space<vmem>>, %arg9: memref<8x128xf32, #tpu.memory_space<vmem>>) attributes {dimension_semantics = [], scalar_prefetch = 0 : i64, scratch_operands = 0 : i64, tpu.core_type = #tpu.core_type<tc>} {
    %c0 = arith.constant 0 : index
    %c0_0 = arith.constant 0 : index
    %0 = vector.load %arg0[%c0, %c0_0] : memref<8x128xf32, #tpu.memory_space<vmem>>, vector<8x128xf32>
    %c0_1 = arith.constant 0 : index
    %c0_2 = arith.constant 0 : index
    %1 = vector.load %arg1[%c0_1, %c0_2] : memref<128x640xf32, #tpu.memory_space<vmem>>, vector<128x640xf32>
    %cst = arith.constant dense<0.000000e+00> : vector<8x640xf32>
    %2 = tpu.matmul %0, %1, %cst {dimension_numbers = #tpu.dot_dimension_numbers<[1], [0], [0], [1], [0, 0, 1, 1], [], []>} : vector<8x128xf32>, vector<128x640xf32>, vector<8x640xf32> -> vector<8x640xf32>
    %c0_3 = arith.constant 0 : index
    %c0_4 = arith.constant 0 : index
    %3 = vector.load %arg2[%c0_3, %c0_4] : memref<1x640xf32, #tpu.memory_space<vmem>>, vector<1x640xf32>
    %4 = vector.broadcast %3 : vector<1x640xf32> to vector<8x640xf32>
    %5 = arith.addf %2, %4 : vector<8x640xf32>
    %cst_5 = arith.constant 0.000000e+00 : f32
    %6 = vector.broadcast %cst_5 : f32 to vector<8x640xf32>
    %7 = arith.maximumf %5, %6 : vector<8x640xf32>
    %c0_6 = arith.constant 0 : index
    %c0_7 = arith.constant 0 : index
    %8 = vector.load %arg3[%c0_6, %c0_7] : memref<640x512xf32, #tpu.memory_space<vmem>>, vector<640x512xf32>
    %cst_8 = arith.constant dense<0.000000e+00> : vector<8x512xf32>
    %9 = tpu.matmul %7, %8, %cst_8 {dimension_numbers = #tpu.dot_dimension_numbers<[1], [0], [0], [1], [0, 0, 1, 1], [], []>} : vector<8x640xf32>, vector<640x512xf32>, vector<8x512xf32> -> vector<8x512xf32>
    %c0_9 = arith.constant 0 : index
    %c0_10 = arith.constant 0 : index
    %10 = vector.load %arg4[%c0_9, %c0_10] : memref<1x512xf32, #tpu.memory_space<vmem>>, vector<1x512xf32>
    %11 = vector.broadcast %10 : vector<1x512xf32> to vector<8x512xf32>
    %12 = arith.addf %9, %11 : vector<8x512xf32>
    %cst_11 = arith.constant 0.000000e+00 : f32
    %13 = vector.broadcast %cst_11 : f32 to vector<8x512xf32>
    %14 = arith.maximumf %12, %13 : vector<8x512xf32>
    %c0_12 = arith.constant 0 : index
    %c0_13 = arith.constant 0 : index
    %15 = vector.load %arg5[%c0_12, %c0_13] : memref<512x256xf32, #tpu.memory_space<vmem>>, vector<512x256xf32>
    %cst_14 = arith.constant dense<0.000000e+00> : vector<8x256xf32>
    %16 = tpu.matmul %14, %15, %cst_14 {dimension_numbers = #tpu.dot_dimension_numbers<[1], [0], [0], [1], [0, 0, 1, 1], [], []>} : vector<8x512xf32>, vector<512x256xf32>, vector<8x256xf32> -> vector<8x256xf32>
    %c0_15 = arith.constant 0 : index
    %c0_16 = arith.constant 0 : index
    %17 = vector.load %arg6[%c0_15, %c0_16] : memref<1x256xf32, #tpu.memory_space<vmem>>, vector<1x256xf32>
    %18 = vector.broadcast %17 : vector<1x256xf32> to vector<8x256xf32>
    %19 = arith.addf %16, %18 : vector<8x256xf32>
    %cst_17 = arith.constant 0.000000e+00 : f32
    %20 = vector.broadcast %cst_17 : f32 to vector<8x256xf32>
    %21 = arith.maximumf %19, %20 : vector<8x256xf32>
    %c0_18 = arith.constant 0 : index
    %c0_19 = arith.constant 0 : index
    %22 = vector.load %arg7[%c0_18, %c0_19] : memref<256x128xf32, #tpu.memory_space<vmem>>, vector<256x128xf32>
    %cst_20 = arith.constant dense<0.000000e+00> : vector<8x128xf32>
    %23 = tpu.matmul %21, %22, %cst_20 {dimension_numbers = #tpu.dot_dimension_numbers<[1], [0], [0], [1], [0, 0, 1, 1], [], []>} : vector<8x256xf32>, vector<256x128xf32>, vector<8x128xf32> -> vector<8x128xf32>
    %c0_21 = arith.constant 0 : index
    %c0_22 = arith.constant 0 : index
    %24 = vector.load %arg8[%c0_21, %c0_22] : memref<1x128xf32, #tpu.memory_space<vmem>>, vector<1x128xf32>
    %25 = vector.broadcast %24 : vector<1x128xf32> to vector<8x128xf32>
    %26 = arith.addf %23, %25 : vector<8x128xf32>
    %c0_23 = arith.constant 0 : index
    %c0_24 = arith.constant 0 : index
    %27 = vector.load %arg9[%c0_23, %c0_24] : memref<8x128xf32, #tpu.memory_space<vmem>>, vector<8x128xf32>
    tpu.vector_store %arg9[%c0_23, %c0_24], %26 {strides = array<i32>} : memref<8x128xf32, #tpu.memory_space<vmem>>, vector<8x128xf32>,
    return
  }
}

</mosaic_0001>

<bundles_post_ra>
// kernel: cnn_forward.1
= control target key start
LH: loop header
LB: loop body
LE: loop exit
PB: predicated region body
PF: predicated region fallthrough
CT: control target
= control target key end

     0   :  { %s3140_s1 = inlined_call_operand.vmem [shape: f32[128,640], index: 1, kind: input, shape index: {}]   ;;  %s3141_s0 = inlined_call_operand.vmem [shape: f32[8,128], index: 0, kind: input, shape index: {}]   ;;  %s3142_s3 = inlined_call_operand.vmem [shape: f32[640,512], index: 3, kind: input, shape index: {}]   ;;  %s3143_s2 = inlined_call_operand.vmem [shape: f32[1,640], index: 2, kind: input, shape index: {}]   ;;  %s3144_s5 = inlined_call_operand.vmem [shape: f32[512,256], index: 5, kind: input, shape index: {}]   ;;  %s3145_s4 = inlined_call_operand.vmem [shape: f32[1,512], index: 4, kind: input, shape index: {}]   ;;  %s3146_s8 = inlined_call_operand.vmem [shape: f32[1,128], index: 8, kind: input, shape index: {}]   ;;  %s3147_s7 = inlined_call_operand.vmem [shape: f32[256,128], index: 7, kind: input, shape index: {}]   ;;  %s3148_s6 = inlined_call_operand.vmem [shape: f32[1,256], index: 6, kind: input, shape index: {}]   ;;  %s3149_s9 = inlined_call_operand.vmem [shape: f32[8,128], index: 9, kind: output, shape index: {}]  }
   0x1   :  { %v108_v0 = vld [vmem:[%s3140_s1 + $0x258] sm:$0xff]  ;;  %v109_v1 = vld [vmem:[%s3140_s1 + $0x260] sm:$0xff]  ;;  %v110_v2 = vld [vmem:[%s3140_s1 + $0x268] sm:$0xff] }
   0x2   :  { %125 = vmatpush.msra.mxu0 %v108_v0  ;;  %145 = vmatpush.msra.mxu1 %v109_v1  ;;  %v111_v3 = vld [vmem:[%s3140_s1 + $0x270] sm:$0xff]  ;;  %v104_v5 = vld [vmem:[%s3140_s1 + $0x238] sm:$0xff]  ;;  %v105_v6 = vld [vmem:[%s3140_s1 + $0x240] sm:$0xff] }
   0x3   :  { %v103_v4 = vld [vmem:[%s3140_s1 + $0x230] sm:$0xff]  ;;  %165 = vmatpush.msra.mxu2 %v110_v2  ;;  %185 = vmatpush.msra.mxu3 %v111_v3  ;;  %v106_v7 = vld [vmem:[%s3140_s1 + $0x248] sm:$0xff]  ;;  %v100_v10 = vld [vmem:[%s3140_s1 + $0x218] sm:$0xff] }
   0x4   :  { %v98_v8 = vld [vmem:[%s3140_s1 + $0x208] sm:$0xff]  ;;  %126 = vmatpush.msra.mxu0 %v103_v4  ;;  %146 = vmatpush.msra.mxu1 %v104_v5  ;;  %v99_v9 = vld [vmem:[%s3140_s1 + $0x210] sm:$0xff]  ;;  %v101_v11 = vld [vmem:[%s3140_s1 + $0x220] sm:$0xff] }
   0x5   :  { %166 = vmatpush.msra.mxu2 %v105_v6  ;;  %186 = vmatpush.msra.mxu3 %v106_v7  ;;  %v93_v12 = vld [vmem:[%s3140_s1 + $0x1e0] sm:$0xff]  ;;  %v94_v13 = vld [vmem:[%s3140_s1 + $0x1e8] sm:$0xff]  ;;  %v95_v14 = vld [vmem:[%s3140_s1 + $0x1f0] sm:$0xff] }
   0x6   :  { %127 = vmatpush.msra.mxu0 %v98_v8  ;;  %147 = vmatpush.msra.mxu1 %v99_v9  ;;  %v96_v15 = vld [vmem:[%s3140_s1 + $0x1f8] sm:$0xff]  ;;  %v89_v17 = vld [vmem:[%s3140_s1 + $0x1c0] sm:$0xff]  ;;  %v90_v18 = vld [vmem:[%s3140_s1 + $0x1c8] sm:$0xff] }
   0x7   :  { %167 = vmatpush.msra.mxu2 %v100_v10  ;;  %187 = vmatpush.msra.mxu3 %v101_v11  ;;  %v88_v16 = vld [vmem:[%s3140_s1 + $0x1b8] sm:$0xff]  ;;  %v91_v19 = vld [vmem:[%s3140_s1 + $0x1d0] sm:$0xff]  ;;  %v85_v22 = vld [vmem:[%s3140_s1 + $0x1a0] sm:$0xff] }
   0x8   :  { %128 = vmatpush.msra.mxu0 %v93_v12  ;;  %148 = vmatpush.msra.mxu1 %v94_v13  ;;  %v83_v20 = vld [vmem:[%s3140_s1 + $0x190] sm:$0xff]  ;;  %v84_v21 = vld [vmem:[%s3140_s1 + $0x198] sm:$0xff]  ;;  %v86_v23 = vld [vmem:[%s3140_s1 + $0x1a8] sm:$0xff] }
   0x9   :  { %168 = vmatpush.msra.mxu2 %v95_v14  ;;  %188 = vmatpush.msra.mxu3 %v96_v15  ;;  %v78_v24 = vld [vmem:[%s3140_s1 + $0x168] sm:$0xff]  ;;  %v79_v25 = vld [vmem:[%s3140_s1 + $0x170] sm:$0xff]  ;;  %v80_v26 = vld [vmem:[%s3140_s1 + $0x178] sm:$0xff] }
   0xa   :  { %129 = vmatpush.msra.mxu0 %v88_v16  ;;  %149 = vmatpush.msra.mxu1 %v89_v17  ;;  %v81_v27 = vld [vmem:[%s3140_s1 + $0x180] sm:$0xff]  ;;  %v74_v29 = vld [vmem:[%s3140_s1 + $0x148] sm:$0xff]  ;;  %v75_v30 = vld [vmem:[%s3140_s1 + $0x150] sm:$0xff] }
   0xb   :  { %169 = vmatpush.msra.mxu2 %v90_v18  ;;  %189 = vmatpush.msra.mxu3 %v91_v19  ;;  %v73_v28 = vld [vmem:[%s3140_s1 + $0x140] sm:$0xff]  ;;  %v76_v31 = vld [vmem:[%s3140_s1 + $0x158] sm:$0xff]  ;;  %v70_v34 = vld [vmem:[%s3140_s1 + $0x128] sm:$0xff] }
   0xc   :  { %130 = vmatpush.msra.mxu0 %v83_v20  ;;  %150 = vmatpush.msra.mxu1 %v84_v21  ;;  %v68_v32 = vld [vmem:[%s3140_s1 + $0x118] sm:$0xff]  ;;  %v69_v33 = vld [vmem:[%s3140_s1 + $0x120] sm:$0xff]  ;;  %v71_v35 = vld [vmem:[%s3140_s1 + $0x130] sm:$0xff] }
   0xd   :  { %170 = vmatpush.msra.mxu2 %v85_v22  ;;  %190 = vmatpush.msra.mxu3 %v86_v23  ;;  %v63_v36 = vld [vmem:[%s3140_s1 + $0xf0] sm:$0xff]  ;;  %v64_v37 = vld [vmem:[%s3140_s1 + $0xf8] sm:$0xff]  ;;  %v65_v38 = vld [vmem:[%s3140_s1 + $0x100] sm:$0xff] }
   0xe   :  { %131 = vmatpush.msra.mxu0 %v78_v24  ;;  %151 = vmatpush.msra.mxu1 %v79_v25  ;;  %v66_v39 = vld [vmem:[%s3140_s1 + $0x108] sm:$0xff]  ;;  %v59_v41 = vld [vmem:[%s3140_s1 + $0xd0] sm:$0xff]  ;;  %v60_v42 = vld [vmem:[%s3140_s1 + $0xd8] sm:$0xff] }
   0xf   :  { %171 = vmatpush.msra.mxu2 %v80_v26  ;;  %191 = vmatpush.msra.mxu3 %v81_v27  ;;  %v58_v40 = vld [vmem:[%s3140_s1 + $0xc8] sm:$0xff]  ;;  %v61_v43 = vld [vmem:[%s3140_s1 + $0xe0] sm:$0xff]  ;;  %v55_v46 = vld [vmem:[%s3140_s1 + $0xb0] sm:$0xff] }
  0x10   :  { %132 = vmatpush.msra.mxu0 %v73_v28  ;;  %152 = vmatpush.msra.mxu1 %v74_v29  ;;  %v53_v44 = vld [vmem:[%s3140_s1 + $0xa0] sm:$0xff]  ;;  %v54_v45 = vld [vmem:[%s3140_s1 + $0xa8] sm:$0xff]  ;;  %v56_v47 = vld [vmem:[%s3140_s1 + $0xb8] sm:$0xff] }
  0x11   :  { %172 = vmatpush.msra.mxu2 %v75_v30  ;;  %192 = vmatpush.msra.mxu3 %v76_v31  ;;  %v48_v48 = vld [vmem:[%s3140_s1 + $0x78] sm:$0xff]  ;;  %v49_v49 = vld [vmem:[%s3140_s1 + $0x80] sm:$0xff]  ;;  %v50_v50 = vld [vmem:[%s3140_s1 + $0x88] sm:$0xff] }
  0x12   :  { %133 = vmatpush.msra.mxu0 %v68_v32  ;;  %153 = vmatpush.msra.mxu1 %v69_v33  ;;  %v51_v51 = vld [vmem:[%s3140_s1 + $0x90] sm:$0xff]  ;;  %v44_v53 = vld [vmem:[%s3140_s1 + $0x58] sm:$0xff]  ;;  %v45_v54 = vld [vmem:[%s3140_s1 + $0x60] sm:$0xff] }
  0x13   :  { %173 = vmatpush.msra.mxu2 %v70_v34  ;;  %193 = vmatpush.msra.mxu3 %v71_v35  ;;  %v43_v52 = vld [vmem:[%s3140_s1 + $0x50] sm:$0xff]  ;;  %v46_v55 = vld [vmem:[%s3140_s1 + $0x68] sm:$0xff]  ;;  %v40_v58 = vld [vmem:[%s3140_s1 + $0x38] sm:$0xff] }
  0x14   :  { %134 = vmatpush.msra.mxu0 %v63_v36  ;;  %154 = vmatpush.msra.mxu1 %v64_v37  ;;  %v38_v56 = vld [vmem:[%s3140_s1 + $0x28] sm:$0xff]  ;;  %v39_v57 = vld [vmem:[%s3140_s1 + $0x30] sm:$0xff]  ;;  %v41_v59 = vld [vmem:[%s3140_s1 + $0x40] sm:$0xff] }
  0x15   :  { %174 = vmatpush.msra.mxu2 %v65_v38  ;;  %194 = vmatpush.msra.mxu3 %v66_v39  ;;  %v33_v60 = vld [vmem:[%s3140_s1] sm:$0xff]  ;;  %v34_v61 = vld [vmem:[%s3140_s1 + $0x8] sm:$0xff]  ;;  %v35_v62 = vld [vmem:[%s3140_s1 + $0x10] sm:$0xff] }
  0x16   :  { %135 = vmatpush.msra.mxu0 %v58_v40  ;;  %155 = vmatpush.msra.mxu1 %v59_v41  ;;  %v36_v63 = vld [vmem:[%s3140_s1 + $0x18] sm:$0xff]  ;;  %v1587_v0 = vld [vmem:[%s3141_s0] sm:$0xff]  ;;  %v107_v2 = vld [vmem:[%s3140_s1 + $0x250] sm:$0xff] }
  0x17   :  { %175 = vmatpush.msra.mxu2 %v60_v42  ;;  %195 = vmatpush.msra.mxu3 %v61_v43  ;;  %v112_v1 = vld [vmem:[%s3140_s1 + $0x278] sm:$0xff]  ;;  %v290_v3 = vld [vmem:[%s3142_s3 + $0x1e0] sm:$0xff]  ;;  %v102_v7 = vld [vmem:[%s3140_s1 + $0x228] sm:$0xff] }
  0x18   :  { %136 = vmatpush.msra.mxu0 %v53_v44  ;;  %156 = vmatpush.msra.mxu1 %v54_v45  ;;  %v354_v4 = vld [vmem:[%s3142_s3 + $0x3e0] sm:$0xff]  ;;  %v92_v16 = vld [vmem:[%s3140_s1 + $0x1d8] sm:$0xff]  ;;  %v87_v20 = vld [vmem:[%s3140_s1 + $0x1b0] sm:$0xff] }
  0x19   :  { %176 = vmatpush.msra.mxu2 %v55_v46  ;;  %196 = vmatpush.msra.mxu3 %v56_v47  ;;  %v286_v5 = vld [vmem:[%s3142_s3 + $0x1c0] sm:$0xff]  ;;  %v82_v24 = vld [vmem:[%s3140_s1 + $0x188] sm:$0xff]  ;;  %v72_v32 = vld [vmem:[%s3140_s1 + $0x138] sm:$0xff] }
  0x1a   :  { %137 = vmatpush.msra.mxu0 %v48_v48  ;;  %157 = vmatpush.msra.mxu1 %v49_v49  ;;  %v350_v6 = vld [vmem:[%s3142_s3 + $0x3c0] sm:$0xff]  ;;  %v67_v36 = vld [vmem:[%s3140_s1 + $0x110] sm:$0xff]  ;;  %v62_v40 = vld [vmem:[%s3140_s1 + $0xe8] sm:$0xff] }
  0x1b   :  { %177 = vmatpush.msra.mxu2 %v50_v50  ;;  %197 = vmatpush.msra.mxu3 %v51_v51  ;;  %v282_v8 = vld [vmem:[%s3142_s3 + $0x1a0] sm:$0xff]  ;;  %v52_v48 = vld [vmem:[%s3140_s1 + $0x98] sm:$0xff] }
  0x1c   :  { %138 = vmatpush.msra.mxu0 %v43_v52  ;;  %158 = vmatpush.msra.mxu1 %v44_v53  ;;  %v418_v9 = vld [vmem:[%s3142_s3 + $0x5e0] sm:$0xff]  ;;  %v47_v52 = vld [vmem:[%s3140_s1 + $0x70] sm:$0xff] }
  0x1d   :  { %178 = vmatpush.msra.mxu2 %v45_v54  ;;  %198 = vmatpush.msra.mxu3 %v46_v55  ;;  %v346_v10 = vld [vmem:[%s3142_s3 + $0x3a0] sm:$0xff] }
  0x1e   :  { %139 = vmatpush.msra.mxu0 %v38_v56  ;;  %159 = vmatpush.msra.mxu1 %v39_v57  ;;  %v97_v11 = vld [vmem:[%s3140_s1 + $0x200] sm:$0xff]  ;;  %v42_v56 = vld [vmem:[%s3140_s1 + $0x48] sm:$0xff] }
  0x1f   :  { %179 = vmatpush.msra.mxu2 %v40_v58  ;;  %199 = vmatpush.msra.mxu3 %v41_v59  ;;  %v278_v12 = vld [vmem:[%s3142_s3 + $0x180] sm:$0xff] }
  0x20   :  { %140 = vmatpush.msra.mxu0 %v33_v60  ;;  %160 = vmatpush.msra.mxu1 %v34_v61  ;;  %v414_v13 = vld [vmem:[%s3142_s3 + $0x5c0] sm:$0xff] }
  0x21   :  { %180 = vmatpush.msra.mxu2 %v35_v62  ;;  %200 = vmatpush.msra.mxu3 %v36_v63  ;;  %v342_v14 = vld [vmem:[%s3142_s3 + $0x380] sm:$0xff] }
  0x22   :  { %141 = vmatmul.f32.vlgmr.msra.gmra.mxu0 %v1587_v0  ;;  %161 = vmatmul.f32.vlgmr.msra.gmra.mxu1 %v1587_v0  ;;  %v410_v15 = vld [vmem:[%s3142_s3 + $0x5a0] sm:$0xff] }
  0x23   :  { %181 = vmatmul.f32.vlgmr.msra.gmra.mxu2 %v1587_v0  ;;  %201 = vmatmul.f32.vlgmr.msra.gmra.mxu3 %v1587_v0  ;;  %v274_v17 = vld [vmem:[%s3142_s3 + $0x160] sm:$0xff] }
  0x24   :  { %205 = vmatpush.msrb.mxu0 %v112_v1  ;;  %560 = vmatpush.msrb.mxu1 %v290_v3  ;;  %v338_v18 = vld [vmem:[%s3142_s3 + $0x360] sm:$0xff] }
  0x25   :  { %580 = vmatpush.msrb.mxu2 %v354_v4  ;;  %600 = vmatpush.msrb.mxu3 %v418_v9  ;;  %v406_v19 = vld [vmem:[%s3142_s3 + $0x580] sm:$0xff]  ;;  %v283_v9 = vld [vmem:[%s3142_s3 + $0x1a8] sm:$0xff] }
  0x26   :  { %206 = vmatpush.msrb.mxu0 %v107_v2  ;;  %561 = vmatpush.msrb.mxu1 %v286_v5  ;;  %v270_v21 = vld [vmem:[%s3142_s3 + $0x140] sm:$0xff]  ;;  %v291_v2 = vld [vmem:[%s3142_s3 + $0x1e8] sm:$0xff] }
  0x27   :  { %581 = vmatpush.msrb.mxu2 %v350_v6  ;;  %601 = vmatpush.msrb.mxu3 %v414_v13  ;;  %v334_v22 = vld [vmem:[%s3142_s3 + $0x340] sm:$0xff]  ;;  %v287_v6 = vld [vmem:[%s3142_s3 + $0x1c8] sm:$0xff] }
  0x28   :  { %207 = vmatpush.msrb.mxu0 %v102_v7  ;;  %562 = vmatpush.msrb.mxu1 %v282_v8  ;;  %v402_v23 = vld [vmem:[%s3142_s3 + $0x560] sm:$0xff]  ;;  %v279_v13 = vld [vmem:[%s3142_s3 + $0x188] sm:$0xff] }
  0x29   :  { %582 = vmatpush.msrb.mxu2 %v346_v10  ;;  %602 = vmatpush.msrb.mxu3 %v410_v15  ;;  %v266_v25 = vld [vmem:[%s3142_s3 + $0x120] sm:$0xff]  ;;  %v355_v10 = vld [vmem:[%s3142_s3 + $0x3e8] sm:$0xff] }
  0x2a   :  { %208 = vmatpush.msrb.mxu0 %v97_v11  ;;  %563 = vmatpush.msrb.mxu1 %v278_v12  ;;  %v330_v26 = vld [vmem:[%s3142_s3 + $0x320] sm:$0xff] }
  0x2b   :  { %583 = vmatpush.msrb.mxu2 %v342_v14  ;;  %603 = vmatpush.msrb.mxu3 %v406_v19  ;;  %v398_v27 = vld [vmem:[%s3142_s3 + $0x540] sm:$0xff]  ;;  %v351_v14 = vld [vmem:[%s3142_s3 + $0x3c8] sm:$0xff] }
  0x2c   :  { %209 = vmatpush.msrb.mxu0 %v92_v16  ;;  %564 = vmatpush.msrb.mxu1 %v274_v17  ;;  %v77_v28 = vld [vmem:[%s3140_s1 + $0x160] sm:$0xff]  ;;  %v275_v17 = vld [vmem:[%s3142_s3 + $0x168] sm:$0xff] }
  0x2d   :  { %584 = vmatpush.msrb.mxu2 %v338_v18  ;;  %v262_v29 = vld [vmem:[%s3142_s3 + $0x100] sm:$0xff]  ;;  %604 = vmatpush.msrb.mxu3 %v402_v23  ;;  %v347_v18 = vld [vmem:[%s3142_s3 + $0x3a8] sm:$0xff] }
  0x2e   :  { %210 = vmatpush.msrb.mxu0 %v87_v20  ;;  %565 = vmatpush.msrb.mxu1 %v270_v21  ;;  %v326_v30 = vld [vmem:[%s3142_s3 + $0x300] sm:$0xff]  ;;  %v271_v21 = vld [vmem:[%s3142_s3 + $0x148] sm:$0xff] }
  0x2f   :  { %585 = vmatpush.msrb.mxu2 %v334_v22  ;;  %v394_v31 = vld [vmem:[%s3142_s3 + $0x520] sm:$0xff]  ;;  %605 = vmatpush.msrb.mxu3 %v398_v27  ;;  %v343_v22 = vld [vmem:[%s3142_s3 + $0x388] sm:$0xff] }
  0x30   :  { %211 = vmatpush.msrb.mxu0 %v82_v24  ;;  %566 = vmatpush.msrb.mxu1 %v266_v25  ;;  %v258_v33 = vld [vmem:[%s3142_s3 + $0xe0] sm:$0xff]  ;;  %v267_v25 = vld [vmem:[%s3142_s3 + $0x128] sm:$0xff] }
  0x31   :  { %586 = vmatpush.msrb.mxu2 %v330_v26  ;;  %v322_v34 = vld [vmem:[%s3142_s3 + $0x2e0] sm:$0xff]  ;;  %606 = vmatpush.msrb.mxu3 %v394_v31  ;;  %v339_v26 = vld [vmem:[%s3142_s3 + $0x368] sm:$0xff] }
  0x32   :  { %212 = vmatpush.msrb.mxu0 %v77_v28  ;;  %567 = vmatpush.msrb.mxu1 %v262_v29  ;;  %v390_v35 = vld [vmem:[%s3142_s3 + $0x500] sm:$0xff]  ;;  %v263_v29 = vld [vmem:[%s3142_s3 + $0x108] sm:$0xff] }
  0x33   :  { %587 = vmatpush.msrb.mxu2 %v326_v30  ;;  %v254_v37 = vld [vmem:[%s3142_s3 + $0xc0] sm:$0xff]  ;;  %607 = vmatpush.msrb.mxu3 %v390_v35  ;;  %v335_v30 = vld [vmem:[%s3142_s3 + $0x348] sm:$0xff] }
  0x34   :  { %213 = vmatpush.msrb.mxu0 %v72_v32  ;;  %568 = vmatpush.msrb.mxu1 %v258_v33  ;;  %v318_v38 = vld [vmem:[%s3142_s3 + $0x2c0] sm:$0xff]  ;;  %v259_v33 = vld [vmem:[%s3142_s3 + $0xe8] sm:$0xff] }
  0x35   :  { %v386_v39 = vld [vmem:[%s3142_s3 + $0x4e0] sm:$0xff]  ;;  %588 = vmatpush.msrb.mxu2 %v322_v34  ;;  %v331_v34 = vld [vmem:[%s3142_s3 + $0x328] sm:$0xff] }
  0x36   :  { %v250_v41 = vld [vmem:[%s3142_s3 + $0xa0] sm:$0xff]  ;;  %214 = vmatpush.msrb.mxu0 %v67_v36  ;;  %569 = vmatpush.msrb.mxu1 %v254_v37  ;;  %v255_v37 = vld [vmem:[%s3142_s3 + $0xc8] sm:$0xff] }
  0x37   :  { %v314_v42 = vld [vmem:[%s3142_s3 + $0x2a0] sm:$0xff]  ;;  %589 = vmatpush.msrb.mxu2 %v318_v38  ;;  %608 = vmatpush.msrb.mxu3 %v386_v39  ;;  %v327_v38 = vld [vmem:[%s3142_s3 + $0x308] sm:$0xff] }
  0x38   :  { %v382_v43 = vld [vmem:[%s3142_s3 + $0x4c0] sm:$0xff]  ;;  %215 = vmatpush.msrb.mxu0 %v62_v40  ;;  %570 = vmatpush.msrb.mxu1 %v250_v41  ;;  %v251_v41 = vld [vmem:[%s3142_s3 + $0xa8] sm:$0xff] }
  0x39   :  { %v57_v44 = vld [vmem:[%s3140_s1 + $0xc0] sm:$0xff]  ;;  %590 = vmatpush.msrb.mxu2 %v314_v42  ;;  %609 = vmatpush.msrb.mxu3 %v382_v43  ;;  %v323_v42 = vld [vmem:[%s3142_s3 + $0x2e8] sm:$0xff] }
  0x3a   :  { %v246_v45 = vld [vmem:[%s3142_s3 + $0x80] sm:$0xff]  ;;  %216 = vmatpush.msrb.mxu0 %v57_v44 }
  0x3b   :  { %v310_v46 = vld [vmem:[%s3142_s3 + $0x280] sm:$0xff]  ;;  %571 = vmatpush.msrb.mxu1 %v246_v45  ;;  %v247_v45 = vld [vmem:[%s3142_s3 + $0x88] sm:$0xff] }
  0x3c   :  { %v378_v47 = vld [vmem:[%s3142_s3 + $0x4a0] sm:$0xff]  ;;  %591 = vmatpush.msrb.mxu2 %v310_v46  ;;  %217 = vmatpush.msrb.mxu0 %v52_v48  ;;  %v319_v46 = vld [vmem:[%s3142_s3 + $0x2c8] sm:$0xff] }
  0x3d   :  { %v242_v49 = vld [vmem:[%s3142_s3 + $0x60] sm:$0xff]  ;;  %610 = vmatpush.msrb.mxu3 %v378_v47 }
  0x3e   :  { %v306_v50 = vld [vmem:[%s3142_s3 + $0x260] sm:$0xff]  ;;  %572 = vmatpush.msrb.mxu1 %v242_v49  ;;  %218 = vmatpush.msrb.mxu0 %v47_v52  ;;  %v243_v49 = vld [vmem:[%s3142_s3 + $0x68] sm:$0xff] }
  0x3f   :  { %v374_v51 = vld [vmem:[%s3142_s3 + $0x480] sm:$0xff]  ;;  %592 = vmatpush.msrb.mxu2 %v306_v50 }
  0x40   :  { %v238_v53 = vld [vmem:[%s3142_s3 + $0x40] sm:$0xff]  ;;  %611 = vmatpush.msrb.mxu3 %v374_v51  ;;  %219 = vmatpush.msrb.mxu0 %v42_v56  ;;  %v407_v56 = vld [vmem:[%s3142_s3 + $0x588] sm:$0xff] }
  0x41   :  { %v302_v54 = vld [vmem:[%s3142_s3 + $0x240] sm:$0xff]  ;;  %573 = vmatpush.msrb.mxu1 %v238_v53  ;;  %v419_v53 = vld [vmem:[%s3142_s3 + $0x5e8] sm:$0xff] }
  0x42   :  { %v370_v55 = vld [vmem:[%s3142_s3 + $0x460] sm:$0xff]  ;;  %593 = vmatpush.msrb.mxu2 %v302_v54  ;;  %v415_v54 = vld [vmem:[%s3142_s3 + $0x5c8] sm:$0xff] }
  0x43   :  { %v234_v57 = vld [vmem:[%s3142_s3 + $0x20] sm:$0xff]  ;;  %612 = vmatpush.msrb.mxu3 %v370_v55  ;;  %v411_v55 = vld [vmem:[%s3142_s3 + $0x5a8] sm:$0xff] }
  0x44   :  { %v298_v58 = vld [vmem:[%s3142_s3 + $0x220] sm:$0xff]  ;;  %574 = vmatpush.msrb.mxu1 %v234_v57  ;;  %v403_v57 = vld [vmem:[%s3142_s3 + $0x568] sm:$0xff] }
  0x45   :  { %v366_v59 = vld [vmem:[%s3142_s3 + $0x440] sm:$0xff]  ;;  %594 = vmatpush.msrb.mxu2 %v298_v58  ;;  %v399_v58 = vld [vmem:[%s3142_s3 + $0x548] sm:$0xff] }
  0x46   :  { %v37_v60 = vld [vmem:[%s3140_s1 + $0x20] sm:$0xff]  ;;  %613 = vmatpush.msrb.mxu3 %v366_v59  ;;  %v395_v59 = vld [vmem:[%s3142_s3 + $0x528] sm:$0xff] }
  0x47   :  { %v230_v61 = vld [vmem:[%s3142_s3] sm:$0xff]  ;;  %220 = vmatpush.msrb.mxu0 %v37_v60  ;;  %v391_v60 = vld [vmem:[%s3142_s3 + $0x508] sm:$0xff] }
  0x48   :  { %v294_v62 = vld [vmem:[%s3142_s3 + $0x200] sm:$0xff]  ;;  %575 = vmatpush.msrb.mxu1 %v230_v61  ;;  %221 = vmatmul.f32.vlgmr.msrb.gmra.mxu0 %v1587_v0  ;;  %v387_v61 = vld [vmem:[%s3142_s3 + $0x4e8] sm:$0xff] }
  0x49   :  { %v482_v63 = vld [vmem:[%s3142_s3 + $0x7e0] sm:$0xff]  ;;  %595 = vmatpush.msrb.mxu2 %v294_v62  ;;  %v383_v62 = vld [vmem:[%s3142_s3 + $0x4c8] sm:$0xff] }
  0x4a   :  { %v546_v1 = vld [vmem:[%s3142_s3 + $0x9e0] sm:$0xff]  ;;  %620 = vmatpush.msra.mxu0 %v482_v63 }
  0x4b   :  { %v362_v3 = vld [vmem:[%s3142_s3 + $0x420] sm:$0xff]  ;;  %640 = vmatpush.msra.mxu1 %v546_v1  ;;  %660 = vmatpush.msra.mxu2 %v291_v2  ;;  %v239_v1 = vld [vmem:[%s3142_s3 + $0x48] sm:$0xff] }
  0x4c   :  { %v478_v4 = vld [vmem:[%s3142_s3 + $0x7c0] sm:$0xff]  ;;  %614 = vmatpush.msrb.mxu3 %v362_v3  ;;  %v315_v2 = vld [vmem:[%s3142_s3 + $0x2a8] sm:$0xff] }
  0x4d   :  { %v542_v5 = vld [vmem:[%s3142_s3 + $0x9c0] sm:$0xff]  ;;  %621 = vmatpush.msra.mxu0 %v478_v4  ;;  %661 = vmatpush.msra.mxu2 %v287_v6  ;;  %v379_v3 = vld [vmem:[%s3142_s3 + $0x4a8] sm:$0xff] }
  0x4e   :  { %v358_v7 = vld [vmem:[%s3142_s3 + $0x400] sm:$0xff]  ;;  %641 = vmatpush.msra.mxu1 %v542_v5  ;;  %v235_v5 = vld [vmem:[%s3142_s3 + $0x28] sm:$0xff] }
  0x4f   :  { %v474_v0 = vld [vmem:[%s3142_s3 + $0x7a0] sm:$0xff]  ;;  %615 = vmatpush.msrb.mxu3 %v358_v7  ;;  %662 = vmatpush.msra.mxu2 %v283_v9  ;;  %v311_v6 = vld [vmem:[%s3142_s3 + $0x288] sm:$0xff] }
  0x50   :  { %v538_v8 = vld [vmem:[%s3142_s3 + $0x9a0] sm:$0xff]  ;;  %622 = vmatpush.msra.mxu0 %v474_v0  ;;  %v375_v7 = vld [vmem:[%s3142_s3 + $0x488] sm:$0xff] }
  0x51   :  { %v470_v11 = vld [vmem:[%s3142_s3 + $0x780] sm:$0xff]  ;;  %642 = vmatpush.msra.mxu1 %v538_v8  ;;  %680 = vmatpush.msra.mxu3 %v355_v10  ;;  %v231_v8 = vld [vmem:[%s3142_s3 + $0x8] sm:$0xff] }
  0x52   :  { %v534_v12 = vld [vmem:[%s3142_s3 + $0x980] sm:$0xff]  ;;  %623 = vmatpush.msra.mxu0 %v470_v11  ;;  %663 = vmatpush.msra.mxu2 %v279_v13  ;;  %v307_v9 = vld [vmem:[%s3142_s3 + $0x268] sm:$0xff] }
  0x53   :  { %v466_v15 = vld [vmem:[%s3142_s3 + $0x760] sm:$0xff]  ;;  %643 = vmatpush.msra.mxu1 %v534_v12  ;;  %681 = vmatpush.msra.mxu3 %v351_v14  ;;  %v371_v10 = vld [vmem:[%s3142_s3 + $0x468] sm:$0xff] }
  0x54   :  { %v530_v16 = vld [vmem:[%s3142_s3 + $0x960] sm:$0xff]  ;;  %624 = vmatpush.msra.mxu0 %v466_v15  ;;  %664 = vmatpush.msra.mxu2 %v275_v17  ;;  %v303_v11 = vld [vmem:[%s3142_s3 + $0x248] sm:$0xff] }
  0x55   :  { %v462_v19 = vld [vmem:[%s3142_s3 + $0x740] sm:$0xff]  ;;  %644 = vmatpush.msra.mxu1 %v530_v16  ;;  %682 = vmatpush.msra.mxu3 %v347_v18  ;;  %v367_v12 = vld [vmem:[%s3142_s3 + $0x448] sm:$0xff] }
  0x56   :  { %v526_v20 = vld [vmem:[%s3142_s3 + $0x940] sm:$0xff]  ;;  %625 = vmatpush.msra.mxu0 %v462_v19  ;;  %665 = vmatpush.msra.mxu2 %v271_v21  ;;  %v299_v13 = vld [vmem:[%s3142_s3 + $0x228] sm:$0xff] }
  0x57   :  { %v458_v23 = vld [vmem:[%s3142_s3 + $0x720] sm:$0xff]  ;;  %645 = vmatpush.msra.mxu1 %v526_v20  ;;  %683 = vmatpush.msra.mxu3 %v343_v22  ;;  %v363_v14 = vld [vmem:[%s3142_s3 + $0x428] sm:$0xff] }
  0x58   :  { %v522_v24 = vld [vmem:[%s3142_s3 + $0x920] sm:$0xff]  ;;  %626 = vmatpush.msra.mxu0 %v458_v23  ;;  %666 = vmatpush.msra.mxu2 %v267_v25  ;;  %v295_v15 = vld [vmem:[%s3142_s3 + $0x208] sm:$0xff] }
  0x59   :  { %v454_v27 = vld [vmem:[%s3142_s3 + $0x700] sm:$0xff]  ;;  %646 = vmatpush.msra.mxu1 %v522_v24  ;;  %684 = vmatpush.msra.mxu3 %v339_v26  ;;  %v359_v16 = vld [vmem:[%s3142_s3 + $0x408] sm:$0xff] }
  0x5a   :  { %v518_v28 = vld [vmem:[%s3142_s3 + $0x900] sm:$0xff]  ;;  %627 = vmatpush.msra.mxu0 %v454_v27  ;;  %667 = vmatpush.msra.mxu2 %v263_v29  ;;  %v483_v26 = vld [vmem:[%s3142_s3 + $0x7e8] sm:$0xff] }
  0x5b   :  { %v450_v31 = vld [vmem:[%s3142_s3 + $0x6e0] sm:$0xff]  ;;  %647 = vmatpush.msra.mxu1 %v518_v28  ;;  %685 = vmatpush.msra.mxu3 %v335_v30  ;;  %v547_v27 = vld [vmem:[%s3142_s3 + $0x9e8] sm:$0xff] }
  0x5c   :  { %v514_v32 = vld [vmem:[%s3142_s3 + $0x8e0] sm:$0xff]  ;;  %628 = vmatpush.msra.mxu0 %v450_v31  ;;  %668 = vmatpush.msra.mxu2 %v259_v33  ;;  %v479_v30 = vld [vmem:[%s3142_s3 + $0x7c8] sm:$0xff] }
  0x5d   :  { %v446_v35 = vld [vmem:[%s3142_s3 + $0x6c0] sm:$0xff]  ;;  %648 = vmatpush.msra.mxu1 %v514_v32  ;;  %686 = vmatpush.msra.mxu3 %v331_v34  ;;  %v543_v31 = vld [vmem:[%s3142_s3 + $0x9c8] sm:$0xff] }
  0x5e   :  { %v510_v36 = vld [vmem:[%s3142_s3 + $0x8c0] sm:$0xff]  ;;  %629 = vmatpush.msra.mxu0 %v446_v35  ;;  %669 = vmatpush.msra.mxu2 %v255_v37  ;;  %v475_v34 = vld [vmem:[%s3142_s3 + $0x7a8] sm:$0xff] }
  0x5f   :  { %v442_v39 = vld [vmem:[%s3142_s3 + $0x6a0] sm:$0xff]  ;;  %649 = vmatpush.msra.mxu1 %v510_v36  ;;  %687 = vmatpush.msra.mxu3 %v327_v38  ;;  %v539_v35 = vld [vmem:[%s3142_s3 + $0x9a8] sm:$0xff] }
  0x60   :  { %v506_v40 = vld [vmem:[%s3142_s3 + $0x8a0] sm:$0xff]  ;;  %630 = vmatpush.msra.mxu0 %v442_v39  ;;  %670 = vmatpush.msra.mxu2 %v251_v41  ;;  %v535_v41 = vld [vmem:[%s3142_s3 + $0x988] sm:$0xff] }
  0x61   :  { %v438_v43 = vld [vmem:[%s3142_s3 + $0x680] sm:$0xff]  ;;  %650 = vmatpush.msra.mxu1 %v506_v40  ;;  %688 = vmatpush.msra.mxu3 %v323_v42  ;;  %v471_v40 = vld [vmem:[%s3142_s3 + $0x788] sm:$0xff]  ;;  %v292_v42 = vld [vmem:[%s3142_s3 + $0x1f0] sm:$0xff] }
  0x62   :  { %v502_v44 = vld [vmem:[%s3142_s3 + $0x880] sm:$0xff]  ;;  %631 = vmatpush.msra.mxu0 %v438_v43  ;;  %671 = vmatpush.msra.mxu2 %v247_v45  ;;  %v356_v43 = vld [vmem:[%s3142_s3 + $0x3f0] sm:$0xff]  ;;  %v531_v45 = vld [vmem:[%s3142_s3 + $0x968] sm:$0xff] }
  0x63   :  { %v434_v47 = vld [vmem:[%s3142_s3 + $0x660] sm:$0xff]  ;;  %651 = vmatpush.msra.mxu1 %v502_v44  ;;  %689 = vmatpush.msra.mxu3 %v319_v46  ;;  %v467_v44 = vld [vmem:[%s3142_s3 + $0x768] sm:$0xff]  ;;  %v288_v46 = vld [vmem:[%s3142_s3 + $0x1d0] sm:$0xff] }
  0x64   :  { %v498_v48 = vld [vmem:[%s3142_s3 + $0x860] sm:$0xff]  ;;  %632 = vmatpush.msra.mxu0 %v434_v47  ;;  %672 = vmatpush.msra.mxu2 %v243_v49  ;;  %v352_v47 = vld [vmem:[%s3142_s3 + $0x3d0] sm:$0xff]  ;;  %v527_v49 = vld [vmem:[%s3142_s3 + $0x948] sm:$0xff] }
  0x65   :  { %v430_v50 = vld [vmem:[%s3142_s3 + $0x640] sm:$0xff]  ;;  %652 = vmatpush.msra.mxu1 %v498_v48  ;;  %690 = vmatpush.msra.mxu3 %v315_v2  ;;  %v463_v48 = vld [vmem:[%s3142_s3 + $0x748] sm:$0xff] }
  0x66   :  { %v426_v51 = vld [vmem:[%s3142_s3 + $0x620] sm:$0xff]  ;;  %633 = vmatpush.msra.mxu0 %v430_v50  ;;  %673 = vmatpush.msra.mxu2 %v239_v1  ;;  %v284_v50 = vld [vmem:[%s3142_s3 + $0x1b0] sm:$0xff]  ;;  %v447_v1 = vld [vmem:[%s3142_s3 + $0x6c8] sm:$0xff] }
  0x67   :  { %v422_v52 = vld [vmem:[%s3142_s3 + $0x600] sm:$0xff]  ;;  %691 = vmatpush.msra.mxu3 %v311_v6  ;;  %v511_v2 = vld [vmem:[%s3142_s3 + $0x8c8] sm:$0xff] }
  0x68   :  { %634 = vmatpush.msra.mxu0 %v426_v51  ;;  %v494_v63 = vld [vmem:[%s3142_s3 + $0x840] sm:$0xff]  ;;  %674 = vmatpush.msra.mxu2 %v235_v5  ;;  %v348_v51 = vld [vmem:[%s3142_s3 + $0x3b0] sm:$0xff]  ;;  %v443_v5 = vld [vmem:[%s3142_s3 + $0x6a8] sm:$0xff] }
  0x69   :  { %653 = vmatpush.msra.mxu1 %v494_v63  ;;  %v490_v4 = vld [vmem:[%s3142_s3 + $0x820] sm:$0xff]  ;;  %692 = vmatpush.msra.mxu3 %v307_v9  ;;  %v336_v63 = vld [vmem:[%s3142_s3 + $0x350] sm:$0xff]  ;;  %v507_v6 = vld [vmem:[%s3142_s3 + $0x8a8] sm:$0xff] }
  0x6a   :  { %635 = vmatpush.msra.mxu0 %v422_v52  ;;  %v486_v0 = vld [vmem:[%s3142_s3 + $0x800] sm:$0xff]  ;;  %675 = vmatpush.msra.mxu2 %v231_v8  ;;  %v459_v52 = vld [vmem:[%s3142_s3 + $0x728] sm:$0xff] }
  0x6b   :  { %654 = vmatpush.msra.mxu1 %v490_v4  ;;  %693 = vmatpush.msra.mxu3 %v303_v11  ;;  %v2029_v17 = vld [vmem:[%s3143_s2] sm:$0x1f]  ;;  %v332_v4 = vld [vmem:[%s3142_s3 + $0x330] sm:$0xff]  ;;  %v439_v8 = vld [vmem:[%s3142_s3 + $0x688] sm:$0xff] }
  0x6c   :  { %700 = vmatpush.msrb.mxu0 %v419_v53  ;;  %v115_v18 = vperm.slane %v2029_v17, 0  ;;  %v116_v19 = vperm.slane %v2029_v17, 1  ;;  %v117_v28 = vperm.slane %v2029_v17, 2  ;;  %v118_v29 = vperm.slane %v2029_v17, 3  ;;  %v523_v53 = vld [vmem:[%s3142_s3 + $0x928] sm:$0xff]  ;;  %v324_v11 = vld [vmem:[%s3142_s3 + $0x2f0] sm:$0xff] }
  0x6d   :  { %655 = vmatpush.msra.mxu1 %v486_v0  ;;  %694 = vmatpush.msra.mxu3 %v299_v13  ;;  %v328_v0 = vld [vmem:[%s3142_s3 + $0x310] sm:$0xff]  ;;  %v503_v9 = vld [vmem:[%s3142_s3 + $0x888] sm:$0xff] }
  0x6e   :  { %701 = vmatpush.msrb.mxu0 %v415_v54  ;;  %v280_v54 = vld [vmem:[%s3142_s3 + $0x190] sm:$0xff]  ;;  %v499_v13 = vld [vmem:[%s3142_s3 + $0x868] sm:$0xff] }
  0x6f   :  { %695 = vmatpush.msra.mxu3 %v295_v15  ;;  %v119_v15 = vperm.slane %v2029_v17, 4  ;;  %v252_v17 = vld [vmem:[%s3142_s3 + $0xb0] sm:$0xff] }
  0x70   :  { %702 = vmatpush.msrb.mxu0 %v411_v55  ;;  %v344_v55 = vld [vmem:[%s3142_s3 + $0x390] sm:$0xff] }
  0x72   :  { %703 = vmatpush.msrb.mxu0 %v407_v56  ;;  %v455_v56 = vld [vmem:[%s3142_s3 + $0x708] sm:$0xff] }
  0x74   :  { %704 = vmatpush.msrb.mxu0 %v403_v57  ;;  %v519_v57 = vld [vmem:[%s3142_s3 + $0x908] sm:$0xff] }
  0x76   :  { %705 = vmatpush.msrb.mxu0 %v399_v58  ;;  %v276_v58 = vld [vmem:[%s3142_s3 + $0x170] sm:$0xff] }
  0x78   :  { %706 = vmatpush.msrb.mxu0 %v395_v59  ;;  %v340_v59 = vld [vmem:[%s3142_s3 + $0x370] sm:$0xff] }
  0x7a   :  { %707 = vmatpush.msrb.mxu0 %v391_v60  ;;  %v451_v60 = vld [vmem:[%s3142_s3 + $0x6e8] sm:$0xff] }
  0x7c   :  { %708 = vmatpush.msrb.mxu0 %v387_v61  ;;  %v515_v61 = vld [vmem:[%s3142_s3 + $0x8e8] sm:$0xff] }
  0x7e   :  { %709 = vmatpush.msrb.mxu0 %v383_v62  ;;  %v272_v62 = vld [vmem:[%s3142_s3 + $0x150] sm:$0xff] }
  0x80   :  { %710 = vmatpush.msrb.mxu0 %v379_v3  ;;  %v268_v3 = vld [vmem:[%s3142_s3 + $0x130] sm:$0xff] }
  0x82   :  { %711 = vmatpush.msrb.mxu0 %v375_v7  ;;  %v264_v7 = vld [vmem:[%s3142_s3 + $0x110] sm:$0xff] }
  0x84   :  { %712 = vmatpush.msrb.mxu0 %v371_v10  ;;  %v260_v10 = vld [vmem:[%s3142_s3 + $0xf0] sm:$0xff] }
  0x86   :  { %713 = vmatpush.msrb.mxu0 %v367_v12  ;;  %v435_v12 = vld [vmem:[%s3142_s3 + $0x668] sm:$0xff] }
  0x88   :  { %714 = vmatpush.msrb.mxu0 %v363_v14  ;;  %v256_v14 = vld [vmem:[%s3142_s3 + $0xd0] sm:$0xff] }
  0x8a   :  { %715 = vmatpush.msrb.mxu0 %v359_v16  ;;  %v320_v16 = vld [vmem:[%s3142_s3 + $0x2d0] sm:$0xff] }
  0x9f   :  { %v142_v20 = vpop.f32.mrf.mxu0  ;;  %v162_v21 = vpop.f32.mrf.mxu1 }
  0xa0   :  { %v143_v22 = vadd.f32 %v142_v20, %v115_v18  ;;  %v163_v23 = vadd.f32 %v162_v21, %v116_v19  ;;  %v431_v18 = vld [vmem:[%s3142_s3 + $0x648] sm:$0xff]  ;;  %v316_v21 = vld [vmem:[%s3142_s3 + $0x2b0] sm:$0xff] }
  0xa1   :  { %v495_v19 = vld [vmem:[%s3142_s3 + $0x848] sm:$0xff] }
  0xa2   :  { %v2033_v24 = vmax.f32 %v143_v22, 0.0  ;;  %v2035_v25 = vmax.f32 %v163_v23, 0.0  ;;  %v427_v22 = vld [vmem:[%s3142_s3 + $0x628] sm:$0xff] }
  0xa4   :  { %576 = vmatmul.f32.vlgmr.msrb.gmra.mxu1 %v2033_v24  ;;  %596 = vmatmul.f32.vlgmr.msrb.gmra.mxu2 %v2035_v25 }
  0xa5   :  { %720 = vmatpush.msrb.mxu1 %v483_v26  ;;  %740 = vmatpush.msrb.mxu2 %v547_v27  ;;  %v491_v26 = vld [vmem:[%s3142_s3 + $0x828] sm:$0xff]  ;;  %v248_v27 = vld [vmem:[%s3142_s3 + $0x90] sm:$0xff] }
  0xa6   :  { %v182_v32 = vpop.f32.mrf.mxu2  ;;  %v202_v33 = vpop.f32.mrf.mxu3 }
  0xa7   :  { %v183_v36 = vadd.f32 %v182_v32, %v117_v28  ;;  %v203_v37 = vadd.f32 %v202_v33, %v118_v29  ;;  %721 = vmatpush.msrb.mxu1 %v479_v30  ;;  %741 = vmatpush.msrb.mxu2 %v543_v31  ;;  %v312_v28 = vld [vmem:[%s3142_s3 + $0x290] sm:$0xff]  ;;  %v423_v29 = vld [vmem:[%s3142_s3 + $0x608] sm:$0xff] }
  0xa8   :  { %v487_v31 = vld [vmem:[%s3142_s3 + $0x808] sm:$0xff]  ;;  %v244_v32 = vld [vmem:[%s3142_s3 + $0x70] sm:$0xff] }
  0xa9   :  { %v2059_v38 = vmax.f32 %v183_v36, 0.0  ;;  %v2061_v39 = vmax.f32 %v203_v37, 0.0  ;;  %722 = vmatpush.msrb.mxu1 %v475_v34  ;;  %742 = vmatpush.msrb.mxu2 %v539_v35  ;;  %v308_v33 = vld [vmem:[%s3142_s3 + $0x270] sm:$0xff] }
  0xaa   :  { %v420_v34 = vld [vmem:[%s3142_s3 + $0x5f0] sm:$0xff] }
  0xab   :  { %616 = vmatmul.f32.vlgmr.msrb.gmra.mxu3 %v2059_v38  ;;  %636 = vmatmul.f32.vlgmr.msra.gmra.mxu0 %v2061_v39  ;;  %v484_v35 = vld [vmem:[%s3142_s3 + $0x7f0] sm:$0xff] }
  0xac   :  { %723 = vmatpush.msrb.mxu1 %v471_v40  ;;  %743 = vmatpush.msrb.mxu2 %v535_v41  ;;  %v240_v36 = vld [vmem:[%s3142_s3 + $0x50] sm:$0xff] }
  0xad   :  { %760 = vmatpush.msrb.mxu3 %v292_v42  ;;  %780 = vmatpush.msra.mxu0 %v356_v43  ;;  %v304_v37 = vld [vmem:[%s3142_s3 + $0x250] sm:$0xff] }
  0xae   :  { %676 = vmatmul.f32.vlgmr.msra.gmra.mxu2 %v2033_v24  ;;  %724 = vmatpush.msrb.mxu1 %v467_v44  ;;  %v416_v40 = vld [vmem:[%s3142_s3 + $0x5d0] sm:$0xff] }
  0xaf   :  { %744 = vmatpush.msrb.mxu2 %v531_v45  ;;  %761 = vmatpush.msrb.mxu3 %v288_v46  ;;  %v480_v41 = vld [vmem:[%s3142_s3 + $0x7d0] sm:$0xff] }
  0xb0   :  { %781 = vmatpush.msra.mxu0 %v352_v47  ;;  %725 = vmatpush.msrb.mxu1 %v463_v48  ;;  %v236_v42 = vld [vmem:[%s3142_s3 + $0x30] sm:$0xff] }
  0xb1   :  { %745 = vmatpush.msrb.mxu2 %v527_v49  ;;  %762 = vmatpush.msrb.mxu3 %v284_v50  ;;  %v300_v43 = vld [vmem:[%s3142_s3 + $0x230] sm:$0xff] }
  0xb2   :  { %782 = vmatpush.msra.mxu0 %v348_v51  ;;  %726 = vmatpush.msrb.mxu1 %v459_v52  ;;  %v412_v44 = vld [vmem:[%s3142_s3 + $0x5b0] sm:$0xff]  ;;  %v293_v51 = vld [vmem:[%s3142_s3 + $0x1f8] sm:$0xff] }
  0xb3   :  { %746 = vmatpush.msrb.mxu2 %v523_v53  ;;  %763 = vmatpush.msrb.mxu3 %v280_v54  ;;  %v476_v45 = vld [vmem:[%s3142_s3 + $0x7b0] sm:$0xff] }
  0xb4   :  { %783 = vmatpush.msra.mxu0 %v344_v55  ;;  %696 = vmatmul.f32.vlgmr.msra.gmra.mxu3 %v2035_v25  ;;  %v232_v46 = vld [vmem:[%s3142_s3 + $0x10] sm:$0xff]  ;;  %v289_v55 = vld [vmem:[%s3142_s3 + $0x1d8] sm:$0xff] }
  0xb5   :  { %716 = vmatmul.f32.vlgmr.msrb.gmra.mxu0 %v2059_v38  ;;  %727 = vmatpush.msrb.mxu1 %v455_v56  ;;  %v296_v47 = vld [vmem:[%s3142_s3 + $0x210] sm:$0xff] }
  0xb6   :  { %747 = vmatpush.msrb.mxu2 %v519_v57  ;;  %764 = vmatpush.msrb.mxu3 %v276_v58  ;;  %v408_v48 = vld [vmem:[%s3142_s3 + $0x590] sm:$0xff] }
  0xb7   :  { %784 = vmatpush.msra.mxu0 %v340_v59  ;;  %728 = vmatpush.msrb.mxu1 %v451_v60  ;;  %v472_v49 = vld [vmem:[%s3142_s3 + $0x790] sm:$0xff]  ;;  %v285_v59 = vld [vmem:[%s3142_s3 + $0x1b8] sm:$0xff] }
  0xb8   :  { %748 = vmatpush.msrb.mxu2 %v515_v61  ;;  %765 = vmatpush.msrb.mxu3 %v272_v62  ;;  %v548_v50 = vld [vmem:[%s3142_s3 + $0x9f0] sm:$0xff] }
  0xb9   :  { %785 = vmatpush.msra.mxu0 %v336_v63  ;;  %729 = vmatpush.msrb.mxu1 %v447_v1  ;;  %v404_v52 = vld [vmem:[%s3142_s3 + $0x570] sm:$0xff]  ;;  %v281_v63 = vld [vmem:[%s3142_s3 + $0x198] sm:$0xff] }
  0xba   :  { %749 = vmatpush.msrb.mxu2 %v511_v2  ;;  %766 = vmatpush.msrb.mxu3 %v268_v3  ;;  %v468_v53 = vld [vmem:[%s3142_s3 + $0x770] sm:$0xff] }
  0xbb   :  { %786 = vmatpush.msra.mxu0 %v332_v4  ;;  %730 = vmatpush.msrb.mxu1 %v443_v5  ;;  %v544_v54 = vld [vmem:[%s3142_s3 + $0x9d0] sm:$0xff]  ;;  %v277_v4 = vld [vmem:[%s3142_s3 + $0x178] sm:$0xff] }
  0xbc   :  { %750 = vmatpush.msrb.mxu2 %v507_v6  ;;  %767 = vmatpush.msrb.mxu3 %v264_v7  ;;  %v400_v56 = vld [vmem:[%s3142_s3 + $0x550] sm:$0xff] }
  0xbd   :  { %787 = vmatpush.msra.mxu0 %v328_v0  ;;  %731 = vmatpush.msrb.mxu1 %v439_v8  ;;  %v464_v57 = vld [vmem:[%s3142_s3 + $0x750] sm:$0xff]  ;;  %v273_v0 = vld [vmem:[%s3142_s3 + $0x158] sm:$0xff] }
  0xbe   :  { %751 = vmatpush.msrb.mxu2 %v503_v9  ;;  %768 = vmatpush.msrb.mxu3 %v260_v10  ;;  %v540_v58 = vld [vmem:[%s3142_s3 + $0x9b0] sm:$0xff] }
  0xbf   :  { %788 = vmatpush.msra.mxu0 %v324_v11  ;;  %732 = vmatpush.msrb.mxu1 %v435_v12  ;;  %v396_v60 = vld [vmem:[%s3142_s3 + $0x530] sm:$0xff]  ;;  %v269_v11 = vld [vmem:[%s3142_s3 + $0x138] sm:$0xff] }
  0xc0   :  { %752 = vmatpush.msrb.mxu2 %v499_v13  ;;  %769 = vmatpush.msrb.mxu3 %v256_v14  ;;  %v460_v61 = vld [vmem:[%s3142_s3 + $0x730] sm:$0xff] }
  0xc1   :  { %789 = vmatpush.msra.mxu0 %v320_v16  ;;  %733 = vmatpush.msrb.mxu1 %v431_v18  ;;  %v536_v62 = vld [vmem:[%s3142_s3 + $0x990] sm:$0xff] }
  0xc2   :  { %753 = vmatpush.msrb.mxu2 %v495_v19  ;;  %770 = vmatpush.msrb.mxu3 %v252_v17  ;;  %v392_v1 = vld [vmem:[%s3142_s3 + $0x510] sm:$0xff]  ;;  %v261_v17 = vld [vmem:[%s3142_s3 + $0xf8] sm:$0xff] }
  0xc3   :  { %790 = vmatpush.msra.mxu0 %v316_v21  ;;  %734 = vmatpush.msrb.mxu1 %v427_v22  ;;  %v456_v2 = vld [vmem:[%s3142_s3 + $0x710] sm:$0xff] }
  0xc4   :  { %754 = vmatpush.msrb.mxu2 %v491_v26  ;;  %771 = vmatpush.msrb.mxu3 %v248_v27  ;;  %v532_v3 = vld [vmem:[%s3142_s3 + $0x970] sm:$0xff] }
  0xc5   :  { %v222_v20 = vpop.f32.mrf.mxu0  ;;  %791 = vmatpush.msra.mxu0 %v312_v28  ;;  %735 = vmatpush.msrb.mxu1 %v423_v29  ;;  %v388_v5 = vld [vmem:[%s3142_s3 + $0x4f0] sm:$0xff]  ;;  %v253_v29 = vld [vmem:[%s3142_s3 + $0xb8] sm:$0xff] }
  0xc6   :  { %v223_v23 = vadd.f32 %v222_v20, %v119_v15  ;;  %755 = vmatpush.msrb.mxu2 %v487_v31  ;;  %772 = vmatpush.msrb.mxu3 %v244_v32  ;;  %v452_v6 = vld [vmem:[%s3142_s3 + $0x6f0] sm:$0xff]  ;;  %v265_v15 = vld [vmem:[%s3142_s3 + $0x118] sm:$0xff] }
  0xc7   :  { %792 = vmatpush.msra.mxu0 %v308_v33  ;;  %v528_v7 = vld [vmem:[%s3142_s3 + $0x950] sm:$0xff] }
  0xc8   :  { %v2216_v30 = vmax.f32 %v223_v23, 0.0  ;;  %820 = vmatpush.msra.mxu2 %v484_v35  ;;  %773 = vmatpush.msrb.mxu3 %v240_v36  ;;  %v384_v8 = vld [vmem:[%s3142_s3 + $0x4d0] sm:$0xff]  ;;  %v257_v23 = vld [vmem:[%s3142_s3 + $0xd8] sm:$0xff] }
  0xc9   :  { %793 = vmatpush.msra.mxu0 %v304_v37  ;;  %v448_v9 = vld [vmem:[%s3142_s3 + $0x6d0] sm:$0xff] }
  0xca   :  { %656 = vmatmul.f32.vlgmr.msra.gmra.mxu1 %v2216_v30  ;;  %821 = vmatpush.msra.mxu2 %v480_v41  ;;  %v524_v10 = vld [vmem:[%s3142_s3 + $0x930] sm:$0xff]  ;;  %v357_v41 = vld [vmem:[%s3142_s3 + $0x3f8] sm:$0xff] }
  0xcb   :  { %800 = vmatpush.msra.mxu1 %v420_v34  ;;  %774 = vmatpush.msrb.mxu3 %v236_v42  ;;  %v380_v12 = vld [vmem:[%s3142_s3 + $0x4b0] sm:$0xff]  ;;  %v249_v34 = vld [vmem:[%s3142_s3 + $0x98] sm:$0xff] }
  0xcc   :  { %794 = vmatpush.msra.mxu0 %v300_v43  ;;  %756 = vmatmul.f32.vlgmr.msrb.gmra.mxu2 %v2216_v30  ;;  %v444_v13 = vld [vmem:[%s3142_s3 + $0x6b0] sm:$0xff]  ;;  %v421_v42 = vld [vmem:[%s3142_s3 + $0x5f8] sm:$0xff] }
  0xcd   :  { %801 = vmatpush.msra.mxu1 %v416_v40  ;;  %822 = vmatpush.msra.mxu2 %v476_v45  ;;  %v520_v14 = vld [vmem:[%s3142_s3 + $0x910] sm:$0xff]  ;;  %v245_v40 = vld [vmem:[%s3142_s3 + $0x78] sm:$0xff] }
  0xce   :  { %775 = vmatpush.msrb.mxu3 %v232_v46  ;;  %795 = vmatpush.msra.mxu0 %v296_v47  ;;  %v376_v16 = vld [vmem:[%s3142_s3 + $0x490] sm:$0xff]  ;;  %v353_v45 = vld [vmem:[%s3142_s3 + $0x3d8] sm:$0xff] }
  0xcf   :  { %802 = vmatpush.msra.mxu1 %v412_v44  ;;  %776 = vmatmul.f32.vlgmr.msrb.gmra.mxu3 %v2033_v24  ;;  %v440_v18 = vld [vmem:[%s3142_s3 + $0x690] sm:$0xff]  ;;  %v241_v44 = vld [vmem:[%s3142_s3 + $0x58] sm:$0xff] }
  0xd0   :  { %796 = vmatmul.f32.vlgmr.msra.gmra.mxu0 %v2035_v25  ;;  %823 = vmatpush.msra.mxu2 %v472_v49  ;;  %v516_v19 = vld [vmem:[%s3142_s3 + $0x8f0] sm:$0xff]  ;;  %v417_v46 = vld [vmem:[%s3142_s3 + $0x5d8] sm:$0xff] }
  0xd1   :  { %803 = vmatpush.msra.mxu1 %v408_v48  ;;  %840 = vmatpush.msra.mxu3 %v548_v50  ;;  %v372_v20 = vld [vmem:[%s3142_s3 + $0x470] sm:$0xff]  ;;  %v237_v48 = vld [vmem:[%s3142_s3 + $0x38] sm:$0xff] }
  0xd2   :  { %860 = vmatpush.msrb.mxu0 %v293_v51  ;;  %736 = vmatmul.f32.vlgmr.msrb.gmra.mxu1 %v2061_v39  ;;  %v436_v21 = vld [vmem:[%s3142_s3 + $0x670] sm:$0xff]  ;;  %v349_v49 = vld [vmem:[%s3142_s3 + $0x3b8] sm:$0xff] }
  0xd3   :  { %804 = vmatpush.msra.mxu1 %v404_v52  ;;  %824 = vmatpush.msra.mxu2 %v468_v53  ;;  %v512_v22 = vld [vmem:[%s3142_s3 + $0x8d0] sm:$0xff]  ;;  %v413_v50 = vld [vmem:[%s3142_s3 + $0x5b8] sm:$0xff] }
  0xd4   :  { %841 = vmatpush.msra.mxu3 %v544_v54  ;;  %861 = vmatpush.msrb.mxu0 %v289_v55  ;;  %v368_v26 = vld [vmem:[%s3142_s3 + $0x450] sm:$0xff]  ;;  %v233_v52 = vld [vmem:[%s3142_s3 + $0x18] sm:$0xff] }
  0xd5   :  { %805 = vmatpush.msra.mxu1 %v400_v56  ;;  %825 = vmatpush.msra.mxu2 %v464_v57  ;;  %v432_v27 = vld [vmem:[%s3142_s3 + $0x650] sm:$0xff]  ;;  %v345_v53 = vld [vmem:[%s3142_s3 + $0x398] sm:$0xff] }
  0xd6   :  { %842 = vmatpush.msra.mxu3 %v540_v58  ;;  %862 = vmatpush.msrb.mxu0 %v285_v59  ;;  %v508_v28 = vld [vmem:[%s3142_s3 + $0x8b0] sm:$0xff]  ;;  %v409_v54 = vld [vmem:[%s3142_s3 + $0x598] sm:$0xff] }
  0xd7   :  { %806 = vmatpush.msra.mxu1 %v396_v60  ;;  %826 = vmatpush.msra.mxu2 %v460_v61  ;;  %v364_v31 = vld [vmem:[%s3142_s3 + $0x430] sm:$0xff]  ;;  %v485_v55 = vld [vmem:[%s3142_s3 + $0x7f8] sm:$0xff] }
  0xd8   :  { %843 = vmatpush.msra.mxu3 %v536_v62  ;;  %863 = vmatpush.msrb.mxu0 %v281_v63  ;;  %v428_v32 = vld [vmem:[%s3142_s3 + $0x630] sm:$0xff]  ;;  %v549_v56 = vld [vmem:[%s3142_s3 + $0x9f8] sm:$0xff] }
  0xd9   :  { %807 = vmatpush.msra.mxu1 %v392_v1  ;;  %827 = vmatpush.msra.mxu2 %v456_v2  ;;  %v504_v33 = vld [vmem:[%s3142_s3 + $0x890] sm:$0xff]  ;;  %v341_v57 = vld [vmem:[%s3142_s3 + $0x378] sm:$0xff] }
  0xda   :  { %844 = vmatpush.msra.mxu3 %v532_v3  ;;  %864 = vmatpush.msrb.mxu0 %v277_v4  ;;  %v360_v35 = vld [vmem:[%s3142_s3 + $0x410] sm:$0xff]  ;;  %v405_v58 = vld [vmem:[%s3142_s3 + $0x578] sm:$0xff] }
  0xdb   :  { %808 = vmatpush.msra.mxu1 %v388_v5  ;;  %828 = vmatpush.msra.mxu2 %v452_v6  ;;  %v424_v36 = vld [vmem:[%s3142_s3 + $0x610] sm:$0xff]  ;;  %v481_v59 = vld [vmem:[%s3142_s3 + $0x7d8] sm:$0xff] }
  0xdc   :  { %845 = vmatpush.msra.mxu3 %v528_v7  ;;  %865 = vmatpush.msrb.mxu0 %v273_v0  ;;  %v500_v37 = vld [vmem:[%s3142_s3 + $0x870] sm:$0xff]  ;;  %v545_v60 = vld [vmem:[%s3142_s3 + $0x9d8] sm:$0xff] }
  0xdd   :  { %809 = vmatpush.msra.mxu1 %v384_v8  ;;  %829 = vmatpush.msra.mxu2 %v448_v9  ;;  %v496_v43 = vld [vmem:[%s3142_s3 + $0x850] sm:$0xff]  ;;  %v401_v61 = vld [vmem:[%s3142_s3 + $0x558] sm:$0xff] }
  0xde   :  { %846 = vmatpush.msra.mxu3 %v524_v10  ;;  %866 = vmatpush.msrb.mxu0 %v269_v11  ;;  %v492_v47 = vld [vmem:[%s3142_s3 + $0x830] sm:$0xff]  ;;  %v477_v62 = vld [vmem:[%s3142_s3 + $0x7b8] sm:$0xff] }
  0xdf   :  { %810 = vmatpush.msra.mxu1 %v380_v12  ;;  %830 = vmatpush.msra.mxu2 %v444_v13  ;;  %v488_v51 = vld [vmem:[%s3142_s3 + $0x810] sm:$0xff]  ;;  %v541_v63 = vld [vmem:[%s3142_s3 + $0x9b8] sm:$0xff] }
  0xe0   :  { %847 = vmatpush.msra.mxu3 %v520_v14  ;;  %867 = vmatpush.msrb.mxu0 %v265_v15  ;;  %v333_v1 = vld [vmem:[%s3142_s3 + $0x338] sm:$0xff] }
  0xe1   :  { %811 = vmatpush.msra.mxu1 %v376_v16  ;;  %831 = vmatpush.msra.mxu2 %v440_v18  ;;  %v397_v2 = vld [vmem:[%s3142_s3 + $0x538] sm:$0xff] }
  0xe2   :  { %848 = vmatpush.msra.mxu3 %v516_v19  ;;  %868 = vmatpush.msrb.mxu0 %v261_v17  ;;  %v473_v3 = vld [vmem:[%s3142_s3 + $0x798] sm:$0xff] }
  0xe3   :  { %812 = vmatpush.msra.mxu1 %v372_v20  ;;  %832 = vmatpush.msra.mxu2 %v436_v21  ;;  %v537_v4 = vld [vmem:[%s3142_s3 + $0x998] sm:$0xff] }
  0xe4   :  { %849 = vmatpush.msra.mxu3 %v512_v22  ;;  %869 = vmatpush.msrb.mxu0 %v257_v23  ;;  %v329_v5 = vld [vmem:[%s3142_s3 + $0x318] sm:$0xff] }
  0xe5   :  { %813 = vmatpush.msra.mxu1 %v368_v26  ;;  %833 = vmatpush.msra.mxu2 %v432_v27  ;;  %v393_v6 = vld [vmem:[%s3142_s3 + $0x518] sm:$0xff] }
  0xe6   :  { %850 = vmatpush.msra.mxu3 %v508_v28  ;;  %870 = vmatpush.msrb.mxu0 %v253_v29  ;;  %v469_v7 = vld [vmem:[%s3142_s3 + $0x778] sm:$0xff] }
  0xe7   :  { %814 = vmatpush.msra.mxu1 %v364_v31  ;;  %834 = vmatpush.msra.mxu2 %v428_v32  ;;  %v533_v0 = vld [vmem:[%s3142_s3 + $0x978] sm:$0xff] }
  0xe8   :  { %851 = vmatpush.msra.mxu3 %v504_v33  ;;  %871 = vmatpush.msrb.mxu0 %v249_v34  ;;  %v325_v8 = vld [vmem:[%s3142_s3 + $0x2f8] sm:$0xff] }
  0xe9   :  { %815 = vmatpush.msra.mxu1 %v360_v35  ;;  %835 = vmatpush.msra.mxu2 %v424_v36  ;;  %v389_v9 = vld [vmem:[%s3142_s3 + $0x4f8] sm:$0xff] }
  0xea   :  { %852 = vmatpush.msra.mxu3 %v500_v37  ;;  %872 = vmatpush.msrb.mxu0 %v245_v40  ;;  %v465_v10 = vld [vmem:[%s3142_s3 + $0x758] sm:$0xff] }
  0xeb   :  { %816 = vmatmul.f32.vlgmr.msra.gmra.mxu1 %v2059_v38  ;;  %836 = vmatmul.f32.vlgmr.msra.gmra.mxu2 %v2061_v39  ;;  %v529_v11 = vld [vmem:[%s3142_s3 + $0x958] sm:$0xff] }
  0xec   :  { %880 = vmatpush.msrb.mxu1 %v357_v41  ;;  %900 = vmatpush.msrb.mxu2 %v421_v42  ;;  %v321_v12 = vld [vmem:[%s3142_s3 + $0x2d8] sm:$0xff] }
  0xed   :  { %853 = vmatpush.msra.mxu3 %v496_v43  ;;  %873 = vmatpush.msrb.mxu0 %v241_v44  ;;  %v385_v13 = vld [vmem:[%s3142_s3 + $0x4d8] sm:$0xff] }
  0xee   :  { %881 = vmatpush.msrb.mxu1 %v353_v45  ;;  %901 = vmatpush.msrb.mxu2 %v417_v46  ;;  %v461_v14 = vld [vmem:[%s3142_s3 + $0x738] sm:$0xff] }
  0xef   :  { %854 = vmatpush.msra.mxu3 %v492_v47  ;;  %874 = vmatpush.msrb.mxu0 %v237_v48  ;;  %v525_v15 = vld [vmem:[%s3142_s3 + $0x938] sm:$0xff]  ;;  %v994_v47 = vld [vmem:[%s3144_s5 + $0xf0] sm:$0xff] }
  0xf0   :  { %882 = vmatpush.msrb.mxu1 %v349_v49  ;;  %902 = vmatpush.msrb.mxu2 %v413_v50  ;;  %v317_v16 = vld [vmem:[%s3142_s3 + $0x2b8] sm:$0xff]  ;;  %v1026_v48 = vld [vmem:[%s3144_s5 + $0x1f0] sm:$0xff] }
  0xf1   :  { %855 = vmatpush.msra.mxu3 %v488_v51  ;;  %875 = vmatpush.msrb.mxu0 %v233_v52  ;;  %v381_v18 = vld [vmem:[%s3142_s3 + $0x4b8] sm:$0xff]  ;;  %v992_v51 = vld [vmem:[%s3144_s5 + $0xe0] sm:$0xff] }
  0xf2   :  { %856 = vmatmul.f32.vlgmr.msra.gmra.mxu3 %v2216_v30  ;;  %876 = vmatmul.f32.vlgmr.msrb.gmra.mxu0 %v2033_v24  ;;  %v337_v24 = vld [vmem:[%s3142_s3 + $0x358] sm:$0xff] }
  0xf3   :  { %883 = vmatpush.msrb.mxu1 %v345_v53  ;;  %903 = vmatpush.msrb.mxu2 %v409_v54  ;;  %v457_v19 = vld [vmem:[%s3142_s3 + $0x718] sm:$0xff]  ;;  %v990_v53 = vld [vmem:[%s3144_s5 + $0xd0] sm:$0xff] }
  0xf4   :  { %920 = vmatpush.msrb.mxu3 %v485_v55  ;;  %940 = vmatpush.msra.mxu0 %v549_v56  ;;  %v521_v17 = vld [vmem:[%s3142_s3 + $0x918] sm:$0xff]  ;;  %v1022_v54 = vld [vmem:[%s3144_s5 + $0x1d0] sm:$0xff]  ;;  %v988_v55 = vld [vmem:[%s3144_s5 + $0xc0] sm:$0xff] }
  0xf5   :  { %884 = vmatpush.msrb.mxu1 %v341_v57  ;;  %904 = vmatpush.msrb.mxu2 %v405_v58  ;;  %v313_v20 = vld [vmem:[%s3142_s3 + $0x298] sm:$0xff]  ;;  %v1020_v56 = vld [vmem:[%s3144_s5 + $0x1c0] sm:$0xff]  ;;  %v986_v57 = vld [vmem:[%s3144_s5 + $0xb0] sm:$0xff] }
  0xf6   :  { %921 = vmatpush.msrb.mxu3 %v481_v59  ;;  %941 = vmatpush.msra.mxu0 %v545_v60  ;;  %v377_v21 = vld [vmem:[%s3142_s3 + $0x498] sm:$0xff]  ;;  %v1016_v58 = vld [vmem:[%s3144_s5 + $0x1a0] sm:$0xff]  ;;  %v982_v59 = vld [vmem:[%s3144_s5 + $0x90] sm:$0xff] }
  0xf7   :  { %885 = vmatpush.msrb.mxu1 %v337_v24  ;;  %905 = vmatpush.msrb.mxu2 %v401_v61  ;;  %v453_v22 = vld [vmem:[%s3142_s3 + $0x6f8] sm:$0xff]  ;;  %v1014_v60 = vld [vmem:[%s3144_s5 + $0x190] sm:$0xff]  ;;  %v980_v61 = vld [vmem:[%s3144_s5 + $0x80] sm:$0xff] }
  0xf8   :  { %922 = vmatpush.msrb.mxu3 %v477_v62  ;;  %942 = vmatpush.msra.mxu0 %v541_v63  ;;  %v517_v23 = vld [vmem:[%s3142_s3 + $0x8f8] sm:$0xff]  ;;  %v1058_v24 = vld [vmem:[%s3144_s5 + $0x2f0] sm:$0xff]  ;;  %v1012_v62 = vld [vmem:[%s3144_s5 + $0x180] sm:$0xff] }
  0xf9   :  { %886 = vmatpush.msrb.mxu1 %v333_v1  ;;  %906 = vmatpush.msrb.mxu2 %v397_v2  ;;  %v309_v26 = vld [vmem:[%s3142_s3 + $0x278] sm:$0xff]  ;;  %v1056_v63 = vld [vmem:[%s3144_s5 + $0x2e0] sm:$0xff]  ;;  %v978_v1 = vld [vmem:[%s3144_s5 + $0x70] sm:$0xff] }
  0xfa   :  { %923 = vmatpush.msrb.mxu3 %v473_v3  ;;  %943 = vmatpush.msra.mxu0 %v537_v4  ;;  %v373_v27 = vld [vmem:[%s3142_s3 + $0x478] sm:$0xff]  ;;  %v1010_v2 = vld [vmem:[%s3144_s5 + $0x170] sm:$0xff]  ;;  %v976_v4 = vld [vmem:[%s3144_s5 + $0x60] sm:$0xff] }
  0xfb   :  { %887 = vmatpush.msrb.mxu1 %v329_v5  ;;  %907 = vmatpush.msrb.mxu2 %v393_v6  ;;  %v449_v28 = vld [vmem:[%s3142_s3 + $0x6d8] sm:$0xff]  ;;  %v1054_v3 = vld [vmem:[%s3144_s5 + $0x2d0] sm:$0xff]  ;;  %v1008_v5 = vld [vmem:[%s3144_s5 + $0x160] sm:$0xff] }
  0xfc   :  { %924 = vmatpush.msrb.mxu3 %v469_v7  ;;  %944 = vmatpush.msra.mxu0 %v533_v0  ;;  %v513_v29 = vld [vmem:[%s3142_s3 + $0x8d8] sm:$0xff]  ;;  %v974_v6 = vld [vmem:[%s3144_s5 + $0x50] sm:$0xff]  ;;  %v972_v0 = vld [vmem:[%s3144_s5 + $0x40] sm:$0xff] }
  0xfd   :  { %888 = vmatpush.msrb.mxu1 %v325_v8  ;;  %908 = vmatpush.msrb.mxu2 %v389_v9  ;;  %v305_v31 = vld [vmem:[%s3142_s3 + $0x258] sm:$0xff]  ;;  %v1006_v7 = vld [vmem:[%s3144_s5 + $0x150] sm:$0xff]  ;;  %v1004_v8 = vld [vmem:[%s3144_s5 + $0x140] sm:$0xff] }
  0xfe   :  { %925 = vmatpush.msrb.mxu3 %v465_v10  ;;  %945 = vmatpush.msra.mxu0 %v529_v11  ;;  %v369_v32 = vld [vmem:[%s3142_s3 + $0x458] sm:$0xff]  ;;  %v970_v9 = vld [vmem:[%s3144_s5 + $0x30] sm:$0xff]  ;;  %v968_v11 = vld [vmem:[%s3144_s5 + $0x20] sm:$0xff] }
  0xff   :  { %889 = vmatpush.msrb.mxu1 %v321_v12  ;;  %909 = vmatpush.msrb.mxu2 %v385_v13  ;;  %v445_v33 = vld [vmem:[%s3142_s3 + $0x6b8] sm:$0xff]  ;;  %v1002_v10 = vld [vmem:[%s3144_s5 + $0x130] sm:$0xff]  ;;  %v1000_v12 = vld [vmem:[%s3144_s5 + $0x120] sm:$0xff] }
 0x100   :  { %926 = vmatpush.msrb.mxu3 %v461_v14  ;;  %946 = vmatpush.msra.mxu0 %v525_v15  ;;  %v509_v34 = vld [vmem:[%s3142_s3 + $0x8b8] sm:$0xff]  ;;  %v1052_v13 = vld [vmem:[%s3144_s5 + $0x2c0] sm:$0xff]  ;;  %v966_v14 = vld [vmem:[%s3144_s5 + $0x10] sm:$0xff] }
 0x101   :  { %890 = vmatpush.msrb.mxu1 %v317_v16  ;;  %910 = vmatpush.msrb.mxu2 %v381_v18  ;;  %v301_v35 = vld [vmem:[%s3142_s3 + $0x238] sm:$0xff]  ;;  %v998_v15 = vld [vmem:[%s3144_s5 + $0x110] sm:$0xff]  ;;  %v1048_v18 = vld [vmem:[%s3144_s5 + $0x2a0] sm:$0xff] }
 0x102   :  { %927 = vmatpush.msrb.mxu3 %v457_v19  ;;  %947 = vmatpush.msra.mxu0 %v521_v17  ;;  %v365_v36 = vld [vmem:[%s3142_s3 + $0x438] sm:$0xff]  ;;  %v1050_v16 = vld [vmem:[%s3144_s5 + $0x2b0] sm:$0xff]  ;;  %v964_v19 = vld [vmem:[%s3144_s5] sm:$0xff] }
 0x103   :  { %891 = vmatpush.msrb.mxu1 %v313_v20  ;;  %911 = vmatpush.msrb.mxu2 %v377_v21  ;;  %v441_v37 = vld [vmem:[%s3142_s3 + $0x698] sm:$0xff]  ;;  %v996_v17 = vld [vmem:[%s3144_s5 + $0x100] sm:$0xff] }
 0x104   :  { %928 = vmatpush.msrb.mxu3 %v453_v22  ;;  %948 = vmatpush.msra.mxu0 %v517_v23  ;;  %v505_v40 = vld [vmem:[%s3142_s3 + $0x898] sm:$0xff]  ;;  %v1046_v22 = vld [vmem:[%s3144_s5 + $0x290] sm:$0xff]  ;;  %v993_v23 = vld [vmem:[%s3144_s5 + $0xe8] sm:$0xff] }
 0x105   :  { %892 = vmatpush.msrb.mxu1 %v309_v26  ;;  %912 = vmatpush.msrb.mxu2 %v373_v27  ;;  %v297_v41 = vld [vmem:[%s3142_s3 + $0x218] sm:$0xff]  ;;  %v1025_v26 = vld [vmem:[%s3144_s5 + $0x1e8] sm:$0xff] }
 0x106   :  { %929 = vmatpush.msrb.mxu3 %v449_v28  ;;  %949 = vmatpush.msra.mxu0 %v513_v29  ;;  %v361_v42 = vld [vmem:[%s3142_s3 + $0x418] sm:$0xff]  ;;  %v1044_v29 = vld [vmem:[%s3144_s5 + $0x280] sm:$0xff] }
 0x107   :  { %893 = vmatpush.msrb.mxu1 %v305_v31  ;;  %913 = vmatpush.msrb.mxu2 %v369_v32  ;;  %v437_v43 = vld [vmem:[%s3142_s3 + $0x678] sm:$0xff]  ;;  %v2783_v31 = vld [vmem:[%s3145_s4] sm:$0xf]  ;;  %v989_v32 = vld [vmem:[%s3144_s5 + $0xc8] sm:$0xff] }
 0x108   :  { %930 = vmatpush.msrb.mxu3 %v445_v33  ;;  %950 = vmatpush.msra.mxu0 %v509_v34  ;;  %v501_v44 = vld [vmem:[%s3142_s3 + $0x878] sm:$0xff]  ;;  %v1021_v33 = vld [vmem:[%s3144_s5 + $0x1c8] sm:$0xff]  ;;  %v552_v34 = vperm.slane %v2783_v31, 0 }
 0x109   :  { %894 = vmatpush.msrb.mxu1 %v301_v35  ;;  %914 = vmatpush.msrb.mxu2 %v365_v36  ;;  %v433_v45 = vld [vmem:[%s3142_s3 + $0x658] sm:$0xff] }
 0x10a   :  { %931 = vmatpush.msrb.mxu3 %v441_v37  ;;  %951 = vmatpush.msra.mxu0 %v505_v40  ;;  %v497_v46 = vld [vmem:[%s3142_s3 + $0x858] sm:$0xff]  ;;  %v1042_v37 = vld [vmem:[%s3144_s5 + $0x270] sm:$0xff] }
 0x10b   :  { %895 = vmatpush.msrb.mxu1 %v297_v41  ;;  %915 = vmatpush.msrb.mxu2 %v361_v42  ;;  %v429_v49 = vld [vmem:[%s3142_s3 + $0x638] sm:$0xff]  ;;  %v1040_v41 = vld [vmem:[%s3144_s5 + $0x260] sm:$0xff]  ;;  %v985_v42 = vld [vmem:[%s3144_s5 + $0xa8] sm:$0xff] }
 0x10c   :  { %932 = vmatpush.msrb.mxu3 %v437_v43  ;;  %952 = vmatpush.msra.mxu0 %v501_v44  ;;  %v493_v50 = vld [vmem:[%s3142_s3 + $0x838] sm:$0xff]  ;;  %v1017_v43 = vld [vmem:[%s3144_s5 + $0x1a8] sm:$0xff]  ;;  %v1038_v44 = vld [vmem:[%s3144_s5 + $0x250] sm:$0xff] }
 0x10d   :  { %896 = vmatmul.f32.vlgmr.msrb.gmra.mxu1 %v2035_v25  ;;  %916 = vmatmul.f32.vlgmr.msrb.gmra.mxu2 %v2059_v38  ;;  %v1024_v25 = vld [vmem:[%s3144_s5 + $0x1e0] sm:$0xff]  ;;  %v425_v38 = vld [vmem:[%s3142_s3 + $0x618] sm:$0xff] }
 0x10e   :  { %933 = vmatpush.msrb.mxu3 %v433_v45  ;;  %953 = vmatpush.msra.mxu0 %v497_v46  ;;  %v489_v52 = vld [vmem:[%s3142_s3 + $0x818] sm:$0xff] }
 0x10f   :  { %1098 = vmatpush.msra.mxu1 %v994_v47  ;;  %1118 = vmatpush.msra.mxu2 %v1026_v48  ;;  %v995_v20 = vld [vmem:[%s3144_s5 + $0xf8] sm:$0xff]  ;;  %v1036_v48 = vld [vmem:[%s3144_s5 + $0x240] sm:$0xff] }
 0x110   :  { %934 = vmatpush.msrb.mxu3 %v429_v49  ;;  %954 = vmatpush.msra.mxu0 %v493_v50  ;;  %v1027_v21 = vld [vmem:[%s3144_s5 + $0x1f8] sm:$0xff]  ;;  %v981_v49 = vld [vmem:[%s3144_s5 + $0x88] sm:$0xff] }
 0x111   :  { %1099 = vmatpush.msra.mxu1 %v992_v51  ;;  %1119 = vmatpush.msra.mxu2 %v1024_v25  ;;  %v991_v27 = vld [vmem:[%s3144_s5 + $0xd8] sm:$0xff]  ;;  %v1013_v50 = vld [vmem:[%s3144_s5 + $0x188] sm:$0xff]  ;;  %v1034_v25 = vld [vmem:[%s3144_s5 + $0x230] sm:$0xff] }
 0x112   :  { %935 = vmatpush.msrb.mxu3 %v425_v38  ;;  %955 = vmatpush.msra.mxu0 %v489_v52  ;;  %v1023_v28 = vld [vmem:[%s3144_s5 + $0x1d8] sm:$0xff] }
 0x113   :  { %936 = vmatmul.f32.vlgmr.msrb.gmra.mxu3 %v2061_v39  ;;  %956 = vmatmul.f32.vlgmr.msra.gmra.mxu0 %v2216_v30  ;;  %v1018_v39 = vld [vmem:[%s3144_s5 + $0x1b0] sm:$0xff]  ;;  %v984_v30 = vld [vmem:[%s3144_s5 + $0xa0] sm:$0xff]  ;;  %v987_v35 = vld [vmem:[%s3144_s5 + $0xb8] sm:$0xff] }
 0x114   :  { %1100 = vmatpush.msra.mxu1 %v990_v53  ;;  %1120 = vmatpush.msra.mxu2 %v1022_v54  ;;  %v1019_v36 = vld [vmem:[%s3144_s5 + $0x1b8] sm:$0xff] }
 0x115   :  { %1138 = vmatpush.msra.mxu3 %v1058_v24  ;;  %v983_v46 = vld [vmem:[%s3144_s5 + $0x98] sm:$0xff] }
 0x116   :  { %1101 = vmatpush.msra.mxu1 %v988_v55  ;;  %1121 = vmatpush.msra.mxu2 %v1020_v56  ;;  %v1015_v47 = vld [vmem:[%s3144_s5 + $0x198] sm:$0xff]  ;;  %v1032_v55 = vld [vmem:[%s3144_s5 + $0x220] sm:$0xff]  ;;  %v977_v56 = vld [vmem:[%s3144_s5 + $0x68] sm:$0xff] }
 0x117   :  { %1139 = vmatpush.msra.mxu3 %v1056_v63  ;;  %v979_v52 = vld [vmem:[%s3144_s5 + $0x78] sm:$0xff]  ;;  %v1005_v63 = vld [vmem:[%s3144_s5 + $0x148] sm:$0xff] }
 0x118   :  { %1102 = vmatpush.msra.mxu1 %v986_v57  ;;  %1122 = vmatpush.msra.mxu2 %v1018_v39  ;;  %v1011_v53 = vld [vmem:[%s3144_s5 + $0x178] sm:$0xff]  ;;  %v1009_v57 = vld [vmem:[%s3144_s5 + $0x168] sm:$0xff]  ;;  %v1090_v39 = vld [vmem:[%s3144_s5 + $0x3f0] sm:$0xff] }
 0x119   :  { %1140 = vmatpush.msra.mxu3 %v1054_v3  ;;  %v1007_v24 = vld [vmem:[%s3144_s5 + $0x158] sm:$0xff]  ;;  %1158 = vmatpush.msrb.mxu0 %v1090_v39  ;;  %v553_v3 = vperm.slane %v2783_v31, 1  ;;  %v1060_v39 = vld [vmem:[%s3144_s5 + $0x300] sm:$0xff] }
 0x11a   :  { %1103 = vmatpush.msra.mxu1 %v984_v30  ;;  %1123 = vmatpush.msra.mxu2 %v1016_v58  ;;  %v1030_v30 = vld [vmem:[%s3144_s5 + $0x210] sm:$0xff]  ;;  %v1088_v58 = vld [vmem:[%s3144_s5 + $0x3e0] sm:$0xff] }
 0x11b   :  { %1141 = vmatpush.msra.mxu3 %v1052_v13  ;;  %1159 = vmatpush.msrb.mxu0 %v1088_v58  ;;  %v1055_v13 = vld [vmem:[%s3144_s5 + $0x2d8] sm:$0xff]  ;;  %v1089_v58 = vld [vmem:[%s3144_s5 + $0x3e8] sm:$0xff] }
 0x11c   :  { %1104 = vmatpush.msra.mxu1 %v982_v59  ;;  %1124 = vmatpush.msra.mxu2 %v1014_v60  ;;  %v975_v60 = vld [vmem:[%s3144_s5 + $0x58] sm:$0xff] }
 0x11d   :  { %1142 = vmatpush.msra.mxu3 %v1050_v16  ;;  %v967_v16 = vld [vmem:[%s3144_s5 + $0x18] sm:$0xff] }
 0x11e   :  { %1105 = vmatpush.msra.mxu1 %v980_v61  ;;  %1125 = vmatpush.msra.mxu2 %v1012_v62  ;;  %v1028_v61 = vld [vmem:[%s3144_s5 + $0x200] sm:$0xff]  ;;  %v973_v62 = vld [vmem:[%s3144_s5 + $0x48] sm:$0xff] }
 0x11f   :  { %1143 = vmatpush.msra.mxu3 %v1048_v18  ;;  %v999_v18 = vld [vmem:[%s3144_s5 + $0x118] sm:$0xff] }
 0x120   :  { %1106 = vmatpush.msra.mxu1 %v978_v1  ;;  %1126 = vmatpush.msra.mxu2 %v1010_v2  ;;  %v1059_v2 = vld [vmem:[%s3144_s5 + $0x2f8] sm:$0xff] }
 0x121   :  { %1144 = vmatpush.msra.mxu3 %v1046_v22  ;;  %v577_v40 = vpop.f32.mrf.mxu1  ;;  %v997_v22 = vld [vmem:[%s3144_s5 + $0x108] sm:$0xff] }
 0x122   :  { %1107 = vmatpush.msra.mxu1 %v976_v4  ;;  %1127 = vmatpush.msra.mxu2 %v1008_v5  ;;  %v578_v45 = vadd.f32 %v577_v40, %v552_v34  ;;  %v971_v5 = vld [vmem:[%s3144_s5 + $0x38] sm:$0xff]  ;;  %v1078_v40 = vld [vmem:[%s3144_s5 + $0x390] sm:$0xff] }
 0x123   :  { %1145 = vmatpush.msra.mxu3 %v1044_v29  ;;  %v1049_v29 = vld [vmem:[%s3144_s5 + $0x2a8] sm:$0xff] }
 0x124   :  { %1108 = vmatpush.msra.mxu1 %v974_v6  ;;  %1128 = vmatpush.msra.mxu2 %v1006_v7  ;;  %v1003_v6 = vld [vmem:[%s3144_s5 + $0x138] sm:$0xff] }
 0x125   :  { %1146 = vmatpush.msra.mxu3 %v1042_v37  ;;  %v1047_v37 = vld [vmem:[%s3144_s5 + $0x298] sm:$0xff] }
 0x126   :  { %1109 = vmatpush.msra.mxu1 %v972_v0  ;;  %1129 = vmatpush.msra.mxu2 %v1004_v8  ;;  %v1057_v8 = vld [vmem:[%s3144_s5 + $0x2e8] sm:$0xff] }
 0x127   :  { %1147 = vmatpush.msra.mxu3 %v1040_v41  ;;  %v597_v51 = vpop.f32.mrf.mxu2 }
 0x128   :  { %1110 = vmatpush.msra.mxu1 %v970_v9  ;;  %1130 = vmatpush.msra.mxu2 %v1002_v10  ;;  %v598_v38 = vadd.f32 %v597_v51, %v578_v45  ;;  %v637_v1 = vpop.f32.mrf.mxu0  ;;  %v969_v10 = vld [vmem:[%s3144_s5 + $0x28] sm:$0xff]  ;;  %v1043_v45 = vld [vmem:[%s3144_s5 + $0x278] sm:$0xff] }
 0x129   :  { %1148 = vmatpush.msra.mxu3 %v1038_v44  ;;  %v1037_v51 = vld [vmem:[%s3144_s5 + $0x248] sm:$0xff] }
 0x12a   :  { %1111 = vmatpush.msra.mxu1 %v968_v11  ;;  %1131 = vmatpush.msra.mxu2 %v1000_v12  ;;  %v1001_v11 = vld [vmem:[%s3144_s5 + $0x128] sm:$0xff] }
 0x12b   :  { %1149 = vmatpush.msra.mxu3 %v1036_v48  ;;  %v1072_v48 = vld [vmem:[%s3144_s5 + $0x360] sm:$0xff] }
 0x12c   :  { %1112 = vmatpush.msra.mxu1 %v966_v14  ;;  %1132 = vmatpush.msra.mxu2 %v998_v15 }
 0x12d   :  { %1150 = vmatpush.msra.mxu3 %v1034_v25  ;;  %v1068_v25 = vld [vmem:[%s3144_s5 + $0x340] sm:$0xff] }
 0x12e   :  { %1113 = vmatpush.msra.mxu1 %v964_v19  ;;  %1133 = vmatpush.msra.mxu2 %v996_v17  ;;  %v617_v54 = vpop.f32.mrf.mxu3  ;;  %v1086_v19 = vld [vmem:[%s3144_s5 + $0x3d0] sm:$0xff]  ;;  %v1053_v17 = vld [vmem:[%s3144_s5 + $0x2c8] sm:$0xff] }
 0x12f   :  { %v618_v59 = vadd.f32 %v617_v54, %v598_v38  ;;  %1151 = vmatpush.msra.mxu3 %v1032_v55  ;;  %1160 = vmatpush.msrb.mxu0 %v1086_v19  ;;  %v1035_v38 = vld [vmem:[%s3144_s5 + $0x238] sm:$0xff]  ;;  %v1064_v54 = vld [vmem:[%s3144_s5 + $0x320] sm:$0xff] }
 0x130   :  { %1178 = vmatpush.msrb.mxu1 %v995_v20  ;;  %1198 = vmatpush.msrb.mxu2 %v1027_v21  ;;  %v965_v21 = vld [vmem:[%s3144_s5 + $0x8] sm:$0xff]  ;;  %v1031_v55 = vld [vmem:[%s3144_s5 + $0x218] sm:$0xff] }
 0x131   :  { %1152 = vmatpush.msra.mxu3 %v1030_v30  ;;  %v638_v4 = vadd.f32 %v637_v1, %v618_v59  ;;  %v677_v7 = vpop.f32.mrf.mxu2  ;;  %v1091_v30 = vld [vmem:[%s3144_s5 + $0x3f8] sm:$0xff]  ;;  %v554_v59 = vperm.slane %v2783_v31, 2 }
 0x132   :  { %1179 = vmatpush.msrb.mxu1 %v993_v23  ;;  %1199 = vmatpush.msrb.mxu2 %v1025_v26  ;;  %v678_v14 = vadd.f32 %v677_v7, %v553_v3  ;;  %v1084_v23 = vld [vmem:[%s3144_s5 + $0x3c0] sm:$0xff]  ;;  %v1051_v26 = vld [vmem:[%s3144_s5 + $0x2b8] sm:$0xff]  ;;  %v1081_v3 = vld [vmem:[%s3144_s5 + $0x3a8] sm:$0xff] }
 0x133   :  { %1153 = vmatpush.msra.mxu3 %v1028_v61  ;;  %1161 = vmatpush.msrb.mxu0 %v1084_v23  ;;  %v1085_v61 = vld [vmem:[%s3144_s5 + $0x3c8] sm:$0xff]  ;;  %v1063_v19 = vld [vmem:[%s3144_s5 + $0x318] sm:$0xff] }
 0x134   :  { %1180 = vmatpush.msrb.mxu1 %v991_v27  ;;  %1200 = vmatpush.msrb.mxu2 %v1023_v28  ;;  %v717_v27 = vpop.f32.mrf.mxu0  ;;  %v1082_v28 = vld [vmem:[%s3144_s5 + $0x3b0] sm:$0xff] }
 0x135   :  { %1218 = vmatpush.msrb.mxu3 %v1059_v2  ;;  %1162 = vmatpush.msrb.mxu0 %v1082_v28 }
 0x136   :  { %1181 = vmatpush.msrb.mxu1 %v989_v32  ;;  %1201 = vmatpush.msrb.mxu2 %v1021_v33 }
 0x137   :  { %v697_v12 = vpop.f32.mrf.mxu3  ;;  %1219 = vmatpush.msrb.mxu3 %v1057_v8 }
 0x138   :  { %1182 = vmatpush.msrb.mxu1 %v987_v35  ;;  %1202 = vmatpush.msrb.mxu2 %v1019_v36  ;;  %v698_v20 = vadd.f32 %v697_v12, %v678_v14  ;;  %v1080_v36 = vld [vmem:[%s3144_s5 + $0x3a0] sm:$0xff]  ;;  %v1073_v12 = vld [vmem:[%s3144_s5 + $0x368] sm:$0xff]  ;;  %v1071_v14 = vld [vmem:[%s3144_s5 + $0x358] sm:$0xff] }
 0x139   :  { %1220 = vmatpush.msrb.mxu3 %v1055_v13  ;;  %1163 = vmatpush.msrb.mxu0 %v1080_v36  ;;  %v1275_v36 = vld [vmem:[%s3147_s7 + $0x78] sm:$0xff] }
 0x13a   :  { %1183 = vmatpush.msrb.mxu1 %v985_v42  ;;  %1203 = vmatpush.msrb.mxu2 %v1017_v43  ;;  %v718_v32 = vadd.f32 %v717_v27, %v698_v20  ;;  %v1045_v42 = vld [vmem:[%s3144_s5 + $0x288] sm:$0xff]  ;;  %v1076_v43 = vld [vmem:[%s3144_s5 + $0x380] sm:$0xff]  ;;  %v555_v20 = vperm.slane %v2783_v31, 3  ;;  %v1274_v31 = vld [vmem:[%s3147_s7 + $0x70] sm:$0xff] }
 0x13b   :  { %1221 = vmatpush.msrb.mxu3 %v1053_v17  ;;  %1164 = vmatpush.msrb.mxu0 %v1078_v40  ;;  %v1061_v17 = vld [vmem:[%s3144_s5 + $0x308] sm:$0xff]  ;;  %v1272_v40 = vld [vmem:[%s3147_s7 + $0x60] sm:$0xff] }
 0x13c   :  { %1184 = vmatpush.msrb.mxu1 %v983_v46  ;;  %1204 = vmatpush.msrb.mxu2 %v1015_v47  ;;  %v1074_v46 = vld [vmem:[%s3144_s5 + $0x370] sm:$0xff]  ;;  %v1041_v47 = vld [vmem:[%s3144_s5 + $0x268] sm:$0xff] }
 0x13d   :  { %1222 = vmatpush.msrb.mxu3 %v1051_v26  ;;  %1165 = vmatpush.msrb.mxu0 %v1076_v43  ;;  %v1270_v43 = vld [vmem:[%s3147_s7 + $0x50] sm:$0xff] }
 0x13e   :  { %1185 = vmatpush.msrb.mxu1 %v981_v49  ;;  %1205 = vmatpush.msrb.mxu2 %v1013_v50  ;;  %v1039_v49 = vld [vmem:[%s3144_s5 + $0x258] sm:$0xff]  ;;  %v1070_v50 = vld [vmem:[%s3144_s5 + $0x350] sm:$0xff] }
 0x13f   :  { %1223 = vmatpush.msrb.mxu3 %v1049_v29  ;;  %1166 = vmatpush.msrb.mxu0 %v1074_v46  ;;  %v1289_v46 = vld [vmem:[%s3147_s7 + $0xe8] sm:$0xff] }
 0x140   :  { %1186 = vmatpush.msrb.mxu1 %v979_v52  ;;  %1206 = vmatpush.msrb.mxu2 %v1011_v53  ;;  %v1066_v52 = vld [vmem:[%s3144_s5 + $0x330] sm:$0xff]  ;;  %v1033_v53 = vld [vmem:[%s3144_s5 + $0x228] sm:$0xff] }
 0x141   :  { %1224 = vmatpush.msrb.mxu3 %v1047_v37  ;;  %1167 = vmatpush.msrb.mxu0 %v1072_v48  ;;  %v1273_v37 = vld [vmem:[%s3147_s7 + $0x68] sm:$0xff]  ;;  %v1288_v48 = vld [vmem:[%s3147_s7 + $0xe0] sm:$0xff] }
 0x142   :  { %1187 = vmatpush.msrb.mxu1 %v977_v56  ;;  %1207 = vmatpush.msrb.mxu2 %v1009_v57  ;;  %v1062_v56 = vld [vmem:[%s3144_s5 + $0x310] sm:$0xff]  ;;  %v1029_v57 = vld [vmem:[%s3144_s5 + $0x208] sm:$0xff] }
 0x143   :  { %1225 = vmatpush.msrb.mxu3 %v1045_v42  ;;  %1168 = vmatpush.msrb.mxu0 %v1070_v50  ;;  %v1291_v42 = vld [vmem:[%s3147_s7 + $0xf8] sm:$0xff] }
 0x144   :  { %1188 = vmatpush.msrb.mxu1 %v975_v60  ;;  %1208 = vmatpush.msrb.mxu2 %v1007_v24  ;;  %v1087_v24 = vld [vmem:[%s3144_s5 + $0x3d8] sm:$0xff] }
 0x145   :  { %1226 = vmatpush.msrb.mxu3 %v1043_v45  ;;  %1169 = vmatpush.msrb.mxu0 %v1068_v25  ;;  %v1269_v45 = vld [vmem:[%s3147_s7 + $0x48] sm:$0xff]  ;;  %v1287_v50 = vld [vmem:[%s3147_s7 + $0xd8] sm:$0xff]  ;;  %v1286_v25 = vld [vmem:[%s3147_s7 + $0xd0] sm:$0xff] }
 0x146   :  { %1189 = vmatpush.msrb.mxu1 %v973_v62  ;;  %1209 = vmatpush.msrb.mxu2 %v1005_v63  ;;  %v1083_v63 = vld [vmem:[%s3144_s5 + $0x3b8] sm:$0xff] }
 0x147   :  { %v657_v0 = vpop.f32.mrf.mxu1  ;;  %1227 = vmatpush.msrb.mxu3 %v1041_v47  ;;  %1170 = vmatpush.msrb.mxu0 %v1066_v52  ;;  %v1268_v47 = vld [vmem:[%s3147_s7 + $0x40] sm:$0xff]  ;;  %v1285_v52 = vld [vmem:[%s3147_s7 + $0xc8] sm:$0xff] }
 0x148   :  { %v658_v9 = vadd.f32 %v657_v0, %v638_v4  ;;  %1190 = vmatpush.msrb.mxu1 %v971_v5  ;;  %1210 = vmatpush.msrb.mxu2 %v1003_v6  ;;  %v1079_v6 = vld [vmem:[%s3144_s5 + $0x398] sm:$0xff]  ;;  %v1077_v0 = vld [vmem:[%s3144_s5 + $0x388] sm:$0xff] }
 0x149   :  { %1228 = vmatpush.msrb.mxu3 %v1039_v49  ;;  %1171 = vmatpush.msrb.mxu0 %v1064_v54  ;;  %v1267_v49 = vld [vmem:[%s3147_s7 + $0x38] sm:$0xff]  ;;  %v1284_v54 = vld [vmem:[%s3147_s7 + $0xc0] sm:$0xff] }
 0x14a   :  { %v960_v15 = vmax.f32 %v658_v9, 0.0  ;;  %1191 = vmatpush.msrb.mxu1 %v969_v10  ;;  %1211 = vmatpush.msrb.mxu2 %v1001_v11  ;;  %v1075_v10 = vld [vmem:[%s3144_s5 + $0x378] sm:$0xff] }
 0x14b   :  { %1229 = vmatpush.msrb.mxu3 %v1037_v51  ;;  %1172 = vmatpush.msrb.mxu0 %v1062_v56  ;;  %v1266_v51 = vld [vmem:[%s3147_s7 + $0x30] sm:$0xff]  ;;  %v1283_v56 = vld [vmem:[%s3147_s7 + $0xb8] sm:$0xff] }
 0x14c   :  { %1114 = vmatmul.f32.vlgmr.msra.gmra.mxu1 %v960_v15  ;;  %1212 = vmatpush.msrb.mxu2 %v999_v18  ;;  %v1065_v18 = vld [vmem:[%s3144_s5 + $0x328] sm:$0xff] }
 0x14d   :  { %1192 = vmatpush.msrb.mxu1 %v967_v16  ;;  %1230 = vmatpush.msrb.mxu3 %v1035_v38  ;;  %v797_v1 = vpop.f32.mrf.mxu0  ;;  %v1067_v16 = vld [vmem:[%s3144_s5 + $0x338] sm:$0xff]  ;;  %v1265_v38 = vld [vmem:[%s3147_s7 + $0x28] sm:$0xff] }
 0x14e   :  { %1213 = vmatpush.msrb.mxu2 %v997_v22  ;;  %1173 = vmatpush.msrb.mxu0 %v1060_v39  ;;  %v1282_v39 = vld [vmem:[%s3147_s7 + $0xb0] sm:$0xff] }
 0x14f   :  { %1193 = vmatpush.msrb.mxu1 %v965_v21  ;;  %v737_v33 = vpop.f32.mrf.mxu1  ;;  %v757_v35 = vpop.f32.mrf.mxu2  ;;  %1231 = vmatpush.msrb.mxu3 %v1033_v53  ;;  %v1264_v53 = vld [vmem:[%s3147_s7 + $0x20] sm:$0xff] }
 0x150   :  { %v738_v34 = vadd.f32 %v737_v33, %v718_v32  ;;  %1238 = vmatpush.msra.mxu0 %v1091_v30  ;;  %v1261_v30 = vld [vmem:[%s3147_s7 + $0x8] sm:$0xff] }
 0x151   :  { %1232 = vmatpush.msrb.mxu3 %v1031_v55  ;;  %1296 = vmatpush.msra.mxu1 %v1275_v36  ;;  %v1263_v55 = vld [vmem:[%s3147_s7 + $0x18] sm:$0xff] }
 0x152   :  { %v758_v41 = vadd.f32 %v757_v35, %v738_v34  ;;  %v777_v60 = vpop.f32.mrf.mxu3  ;;  %1239 = vmatpush.msra.mxu0 %v1089_v58  ;;  %v1281_v58 = vld [vmem:[%s3147_s7 + $0xa8] sm:$0xff] }
 0x153   :  { %1233 = vmatpush.msrb.mxu3 %v1029_v57  ;;  %v778_v62 = vadd.f32 %v777_v60, %v554_v59  ;;  %1297 = vmatpush.msra.mxu1 %v1274_v31  ;;  %v1262_v57 = vld [vmem:[%s3147_s7 + $0x10] sm:$0xff]  ;;  %v1260_v59 = vld [vmem:[%s3147_s7] sm:$0xff] }
 0x154   :  { %1194 = vmatmul.f32.vlgmr.msrb.gmra.mxu1 %v960_v15  ;;  %v961_v44 = vmax.f32 %v758_v41, 0.0  ;;  %1240 = vmatpush.msra.mxu0 %v1087_v24  ;;  %v1069_v15 = vld [vmem:[%s3144_s5 + $0x348] sm:$0xff]  ;;  %v1271_v41 = vld [vmem:[%s3147_s7 + $0x58] sm:$0xff]  ;;  %v1280_v60 = vld [vmem:[%s3147_s7 + $0xa0] sm:$0xff] }
 0x155   :  { %v798_v4 = vadd.f32 %v797_v1, %v778_v62  ;;  %1298 = vmatpush.msra.mxu1 %v1273_v37  ;;  %v1279_v24 = vld [vmem:[%s3147_s7 + $0x98] sm:$0xff]  ;;  %v1277_v62 = vld [vmem:[%s3147_s7 + $0x88] sm:$0xff]  ;;  %v1092_v1 = vld [vmem:[%s3148_s6] sm:$0x3] }
 0x156   :  { %1134 = vmatmul.f32.vlgmr.msra.gmra.mxu2 %v961_v44  ;;  %1241 = vmatpush.msra.mxu0 %v1085_v61  ;;  %v1278_v61 = vld [vmem:[%s3147_s7 + $0x90] sm:$0xff] }
 0x157   :  { %1299 = vmatpush.msra.mxu1 %v1272_v40  ;;  %1316 = vmatpush.msra.mxu2 %v1291_v42 }
 0x158   :  { %1242 = vmatpush.msra.mxu0 %v1083_v63  ;;  %v1276_v63 = vld [vmem:[%s3147_s7 + $0x80] sm:$0xff] }
 0x159   :  { %1300 = vmatpush.msra.mxu1 %v1271_v41 }
 0x15a   :  { %1243 = vmatpush.msra.mxu0 %v1081_v3  ;;  %v1094_v3 = vperm.slane %v1092_v1, 0 }
 0x15b   :  { %1301 = vmatpush.msra.mxu1 %v1270_v43 }
 0x15c   :  { %1244 = vmatpush.msra.mxu0 %v1079_v6 }
 0x15d   :  { %1302 = vmatpush.msra.mxu1 %v1269_v45 }
 0x15e   :  { %1214 = vmatmul.f32.vlgmr.msrb.gmra.mxu2 %v961_v44  ;;  %1245 = vmatpush.msra.mxu0 %v1077_v0  ;;  %v1290_v44 = vld [vmem:[%s3147_s7 + $0xf0] sm:$0xff]  ;;  %v1095_v0 = vperm.slane %v1092_v1, 1 }
 0x15f   :  { %1317 = vmatpush.msra.mxu2 %v1290_v44  ;;  %1303 = vmatpush.msra.mxu1 %v1268_v47 }
 0x160   :  { %1246 = vmatpush.msra.mxu0 %v1075_v10 }
 0x161   :  { %1318 = vmatpush.msra.mxu2 %v1289_v46  ;;  %1304 = vmatpush.msra.mxu1 %v1267_v49 }
 0x162   :  { %1247 = vmatpush.msra.mxu0 %v1073_v12 }
 0x163   :  { %1319 = vmatpush.msra.mxu2 %v1288_v48  ;;  %1305 = vmatpush.msra.mxu1 %v1266_v51 }
 0x164   :  { %1248 = vmatpush.msra.mxu0 %v1071_v14 }
 0x165   :  { %1320 = vmatpush.msra.mxu2 %v1287_v50  ;;  %1306 = vmatpush.msra.mxu1 %v1265_v38 }
 0x166   :  { %1249 = vmatpush.msra.mxu0 %v1069_v15 }
 0x167   :  { %1321 = vmatpush.msra.mxu2 %v1286_v25  ;;  %1307 = vmatpush.msra.mxu1 %v1264_v53 }
 0x168   :  { %v817_v2 = vpop.f32.mrf.mxu1  ;;  %1250 = vmatpush.msra.mxu0 %v1067_v16 }
 0x169   :  { %v818_v7 = vadd.f32 %v817_v2, %v798_v4  ;;  %1322 = vmatpush.msra.mxu2 %v1285_v52  ;;  %1308 = vmatpush.msra.mxu1 %v1263_v55 }
 0x16a   :  { %1251 = vmatpush.msra.mxu0 %v1065_v18 }
 0x16b   :  { %1323 = vmatpush.msra.mxu2 %v1284_v54  ;;  %1309 = vmatpush.msra.mxu1 %v1262_v57 }
 0x16c   :  { %1252 = vmatpush.msra.mxu0 %v1063_v19 }
 0x16d   :  { %1324 = vmatpush.msra.mxu2 %v1283_v56  ;;  %1310 = vmatpush.msra.mxu1 %v1261_v30 }
 0x16e   :  { %v837_v5 = vpop.f32.mrf.mxu2  ;;  %1253 = vmatpush.msra.mxu0 %v1061_v17 }
 0x16f   :  { %v838_v8 = vadd.f32 %v837_v5, %v818_v7  ;;  %v877_v21 = vpop.f32.mrf.mxu0  ;;  %1325 = vmatpush.msra.mxu2 %v1282_v39  ;;  %1311 = vmatpush.msra.mxu1 %v1260_v59 }
 0x170   :  { %v878_v23 = vadd.f32 %v877_v21, %v555_v20  ;;  %v1341_v21 = vld [vmem:[%s3146_s8] ss:$0 sm:$0xff] }
 0x171   :  { %1326 = vmatpush.msra.mxu2 %v1281_v58 }
 0x173   :  { %1327 = vmatpush.msra.mxu2 %v1280_v60 }
 0x175   :  { %v857_v9 = vpop.f32.mrf.mxu3  ;;  %1328 = vmatpush.msra.mxu2 %v1279_v24 }
 0x176   :  { %v858_v11 = vadd.f32 %v857_v9, %v838_v8 }
 0x177   :  { %1329 = vmatpush.msra.mxu2 %v1278_v61 }
 0x178   :  { %v962_v13 = vmax.f32 %v858_v11, 0.0 }
 0x179   :  { %1330 = vmatpush.msra.mxu2 %v1277_v62 }
 0x17a   :  { %1154 = vmatmul.f32.vlgmr.msra.gmra.mxu3 %v962_v13 }
 0x17b   :  { %1331 = vmatpush.msra.mxu2 %v1276_v63 }
 0x182   :  { %1234 = vmatmul.f32.vlgmr.msrb.gmra.mxu3 %v962_v13 }
 0x18a   :  { %v897_v22 = vpop.f32.mrf.mxu1 }
 0x18b   :  { %v898_v27 = vadd.f32 %v897_v22, %v878_v23 }
 0x190   :  { %v917_v26 = vpop.f32.mrf.mxu2  ;;  %v957_v33 = vpop.f32.mrf.mxu0 }
 0x191   :  { %v918_v28 = vadd.f32 %v917_v26, %v898_v27 }
 0x196   :  { %v937_v29 = vpop.f32.mrf.mxu3 }
 0x197   :  { %v938_v32 = vadd.f32 %v937_v29, %v918_v28 }
 0x199   :  { %v958_v34 = vadd.f32 %v957_v33, %v938_v32 }
 0x19b   :  { %v963_v35 = vmax.f32 %v958_v34, 0.0 }
 0x19d   :  { %1174 = vmatmul.f32.vlgmr.msrb.gmra.mxu0 %v963_v35 }
 0x1a5   :  { %1254 = vmatmul.f32.vlgmr.msra.gmra.mxu0 %v963_v35 }
 0x1c9   :  { %v1115_v2 = vpop.f32.mrf.mxu1 }
 0x1ca   :  { %v1116_v6 = vadd.f32 %v1115_v2, %v1094_v3 }
 0x1d1   :  { %v1195_v9 = vpop.f32.mrf.mxu1 }
 0x1d2   :  { %v1196_v13 = vadd.f32 %v1195_v9, %v1095_v0 }
 0x1d9   :  { %v1135_v4 = vpop.f32.mrf.mxu2 }
 0x1da   :  { %v1136_v7 = vadd.f32 %v1135_v4, %v1116_v6 }
 0x1e1   :  { %v1215_v12 = vpop.f32.mrf.mxu2 }
 0x1e2   :  { %v1216_v16 = vadd.f32 %v1215_v12, %v1196_v13 }
 0x1fd   :  { %v1155_v5 = vpop.f32.mrf.mxu3 }
 0x1fe   :  { %v1156_v8 = vadd.f32 %v1155_v5, %v1136_v7 }
 0x205   :  { %v1235_v15 = vpop.f32.mrf.mxu3 }
 0x206   :  { %v1236_v18 = vadd.f32 %v1235_v15, %v1216_v16 }
 0x21a   :  { %v1175_v10 = vpop.f32.mrf.mxu0 }
 0x21b   :  { %v1176_v11 = vadd.f32 %v1175_v10, %v1156_v8 }
 0x21d   :  { %v1258_v14 = vmax.f32 %v1176_v11, 0.0 }
 0x21f   :  { %1312 = vmatmul.f32.vlgmr.msra.gmra.mxu1 %v1258_v14 }
 0x222   :  { %v1255_v19 = vpop.f32.mrf.mxu0 }
 0x223   :  { %v1256_v17 = vadd.f32 %v1255_v19, %v1236_v18 }
 0x225   :  { %v1259_v20 = vmax.f32 %v1256_v17, 0.0 }
 0x227   :  { %1332 = vmatmul.f32.vlgmr.msra.gmra.mxu2 %v1259_v20 }
 0x29c   :  { %v1313_v22 = vpop.f32.mrf.mxu1 }
 0x29d   :  { %v1314_v23 = vadd.f32 %v1341_v21, %v1313_v22 }
 0x2aa   :  { %v1333_v26 = vpop.f32.mrf.mxu2 }
 0x2ab   :  { %v1334_v27 = vadd.f32 %v1333_v26, %v1314_v23 }
 0x2ad   :  { %1336 = vst [vmem:[%s3149_s9] sm:$0xff] %v1334_v27 }

</bundles_post_ra>
